<compile_context>
chip_gen: v7x
topology: tpu7x:2x2x1
jax: 0.10.0
libtpu: 0.0.40
codegen_flags: <defaults>
</compile_context>

<pallas_src>
import functools
import math

import jax
import jax.numpy as jnp
from jax.experimental import pallas as pl
from jax.experimental.pallas import tpu as pltpu


_SUB = 8          # strip height == sublane granule == number of pre-shifted band rows
_TQ_PREF = 256    # preferred Q tile (multiple of 8)
_TK_PREF = 512    # preferred K tile (multiple of 128) -> lane-dense stores
_OUT_VMEM_BUDGET = 20 * 1024 * 1024   # double-buffered output-block budget (v7x: 64 MiB VMEM)


def _round_up(x, m):
    return ((x + m - 1) // m) * m


def _rel_pos_bias_kernel(emb_ref, out_ref, *, bidirectional, max_distance,
                         num_buckets, heads):
    """emb_ref: (num_buckets*heads,) in SMEM (flattened, index [b*heads + h]).
    out_ref: (heads, tq, tk) block in VMEM, written in lane-dense (..., K) layout."""
    _, tq, tk = out_ref.shape
    bw = tq - _SUB + tk                    # band length actually needed
    bw_pad = _round_up(bw, 128)            # pad to whole vregs along lanes

    q0 = pl.program_id(0) * tq
    k0 = pl.program_id(1) * tk

    nb = num_buckets // 2 if bidirectional else num_buckets
    max_exact = nb // 2
    log_denom = math.log(max_distance / max_exact)

    # ---- Toeplitz band (computed once per tile) ------------------------------------------
    # band[s, d] holds the bias for rel = (k0 - q0) + d - (tq - 8) - s, i.e. row s is the band
    # pre-shifted by s.  The (8, tk) strip starting at local row r0 is then band[:, start:start+tk]
    # with start = (tq - 8) - r0 -- the same lane offset for all 8 sublanes.
    d_iota = jax.lax.broadcasted_iota(jnp.int32, (_SUB, bw_pad), 1)
    s_iota = jax.lax.broadcasted_iota(jnp.int32, (_SUB, bw_pad), 0)
    rel = (k0 - q0 - (tq - _SUB)) + d_iota - s_iota          # memory_pos - context_pos

    if bidirectional:
        bucket_base = jnp.where(rel > 0, nb, 0).astype(jnp.int32)
        rel_abs = jnp.abs(rel)
    else:
        bucket_base = jnp.zeros_like(rel)
        rel_abs = -jnp.minimum(rel, 0)

    is_small = rel_abs < max_exact
    rel_f = jnp.maximum(rel_abs.astype(jnp.float32), 1.0)    # clamp only affects dead branch
    # Exact torch op order; int32 cast truncates toward zero like .to(torch.long).
    large = (jnp.log(rel_f / max_exact) / log_denom * (nb - max_exact)).astype(jnp.int32)
    large = jnp.minimum(max_exact + large, nb - 1)
    buckets = bucket_base + jnp.where(is_small, rel_abs, large)   # (8, bw_pad) in [0, NB)

    n_strips = tq // _SUB
    band_vregs = bw_pad // 128
    # Keep live per-head bands under ~24 vregs so the unrolled fill loop does not spill.
    head_chunk = max(1, min(heads, max(1, 24 // band_vregs)))

    for h0 in range(0, heads, head_chunk):
        hs = list(range(h0, min(heads, h0 + head_chunk)))

        # NB-way select-accumulate on the small band (amortized over the whole tile); the tiny
        # table is read once per (bucket, head) as SMEM scalars (sreg -> vreg splat is free).
        bands = [jnp.zeros((_SUB, bw_pad), jnp.float32) for _ in hs]
        for b in range(num_buckets):
            mask = buckets == b
            for i, h in enumerate(hs):
                bands[i] = jnp.where(mask, emb_ref[b * heads + h], bands[i])

        # Toeplitz fill: every 8-row strip is a lane-shifted window of the band.
        # Fully unrolled -> static rotate amounts, lane-dense unmasked stores.
        for t in range(n_strips):
            r0 = t * _SUB
            start = (tq - _SUB) - r0
            shift = (-start) % bw_pad      # jnp.roll convention: rolled[:, j] = band[:, j + start]
            for i, h in enumerate(hs):
                rolled = pltpu.roll(bands[i], shift, 1) if shift else bands[i]
                out_ref[h, pl.ds(r0, _SUB), :] = rolled[:, :tk].astype(out_ref.dtype)


def _pick_tiles(query_len, key_len, heads, out_itemsize):
    tq = min(_TQ_PREF, _round_up(query_len, _SUB))
    tk = min(_TK_PREF, _round_up(key_len, 128))
    # Heads-aware VMEM budget for the double-buffered output block (shrink tq first so stores
    # stay lane-dense).
    while 2 * heads * tq * tk * out_itemsize > _OUT_VMEM_BUDGET and (tq > _SUB or tk > 128):
        if tq > _SUB:
            tq = max(_SUB, _round_up(tq // 2, _SUB))
        else:
            tk = max(128, _round_up(tk // 2, 128))
    # v7x has two TensorCores: make sure the grid has >= 2 blocks whenever possible.
    if pl.cdiv(query_len, tq) == 1 and pl.cdiv(key_len, tk) == 1 and tq > _SUB:
        tq = _round_up(max(_SUB, (query_len + 1) // 2), _SUB)
    return tq, tk


def relative_position_embedding(encoder_hidden, decoder_hidden, emb_weight, *,
                                bidirectional=True, num_buckets=32, max_distance=128,
                                out_dtype=None):
    """Forward of RelativePositionEmbedding1: returns (1, heads_num, query_len, key_len)."""
    query_len = encoder_hidden.shape[1]
    key_len = decoder_hidden.shape[1]
    nb, heads = emb_weight.shape
    assert nb == num_buckets
    out_dtype = emb_weight.dtype if out_dtype is None else jnp.dtype(out_dtype)
    out_itemsize = jnp.dtype(out_dtype).itemsize

    tq, tk = _pick_tiles(query_len, key_len, heads, out_itemsize)
    grid = (pl.cdiv(query_len, tq), pl.cdiv(key_len, tk))

    kernel = functools.partial(
        _rel_pos_bias_kernel, bidirectional=bidirectional, max_distance=max_distance,
        num_buckets=num_buckets, heads=heads)

    bw_pad = _round_up(tq - _SUB + tk, 128)
    cost = pl.CostEstimate(
        flops=8 * heads * query_len * key_len,
        transcendentals=grid[0] * grid[1] * _SUB * bw_pad,
        bytes_accessed=heads * query_len * key_len * out_itemsize
                       + num_buckets * heads * emb_weight.dtype.itemsize,
    )

    vmem_limit = int(min(128 * 1024 * 1024,
                         max(32 * 1024 * 1024,
                             2 * heads * tq * tk * out_itemsize + 8 * 1024 * 1024)))

    out_hqk = pl.pallas_call(
        kernel,
        out_shape=jax.ShapeDtypeStruct((heads, query_len, key_len), out_dtype),
        grid=grid,
        in_specs=[pl.BlockSpec(memory_space=pltpu.MemorySpace.SMEM)],   # tiny 1-D table, resident
        out_specs=pl.BlockSpec((heads, tq, tk), lambda qi, ki: (0, qi, ki)),
        compiler_params=pltpu.CompilerParams(
            # NOTE(v7x): switch the Q axis to pltpu.CORE_PARALLEL if profiling shows an idle TC.
            dimension_semantics=("parallel", "parallel"),
            vmem_limit_bytes=vmem_limit,
        ),
        cost_estimate=cost,
    )(emb_weight.reshape(-1))

    # Leading batch dim is a free expand_dims (no transpose pass).
    return out_hqk[None, ...]


# ----------------------------- verification helpers -----------------------------

def _reference_values(query_len, key_len, emb_weight, bidirectional, num_buckets,
                      max_distance, nudge=0.0):
    """Plain-JAX reference (torch-equivalent). `nudge` shifts the pre-truncation value."""
    ctx = jnp.arange(query_len, dtype=jnp.int32)[:, None]
    mem = jnp.arange(key_len, dtype=jnp.int32)[None, :]
    rel = mem - ctx
    nb = num_buckets
    if bidirectional:
        nb //= 2
        buckets = jnp.where(rel > 0, nb, 0).astype(jnp.int32)
        rel = jnp.abs(rel)
    else:
        buckets = jnp.zeros_like(rel)
        rel = -jnp.minimum(rel, 0)
    max_exact = nb // 2
    is_small = rel < max_exact
    rel_f = jnp.maximum(rel.astype(jnp.float32), 1.0)
    large_f = jnp.log(rel_f / max_exact) / math.log(max_distance / max_exact) * (nb - max_exact)
    large = max_exact + (large_f + nudge).astype(jnp.int32)
    large = jnp.minimum(large, nb - 1)
    buckets = buckets + jnp.where(is_small, rel, large)
    vals = emb_weight[buckets]                                # (Q, K, H)
    return jnp.transpose(vals, (2, 0, 1))[None, ...]          # (1, H, Q, K)


def _check(out, emb_weight, query_len, key_len, bidirectional, num_buckets, max_distance):
    ref = _reference_values(query_len, key_len, emb_weight, bidirectional, num_buckets, max_distance)
    # At exact bucket boundaries (rel = 16/32/64 with default params) the truncation can land on
    # either neighbouring bucket depending on the log implementation; accept either value there,
    # require exact agreement everywhere else.
    ref_lo = _reference_values(query_len, key_len, emb_weight, bidirectional, num_buckets,
                               max_distance, nudge=-1e-3)
    ref_hi = _reference_values(query_len, key_len, emb_weight, bidirectional, num_buckets,
                               max_distance, nudge=+1e-3)
    ok = (jnp.isclose(out, ref, atol=1e-5)
          | jnp.isclose(out, ref_lo, atol=1e-5)
          | jnp.isclose(out, ref_hi, atol=1e-5))
    assert bool(ok.all()), "kernel output does not match reference"


if __name__ == "__main__":
    heads_num = 4
    num_buckets, max_distance = 32, 128

    key = jax.random.PRNGKey(0)
    k1, k2, k3 = jax.random.split(key, 3)

    # Small shapes consistent with the module's forward.
    batch, seq, emb_size = 2, 8, 32
    encoder_hidden = jax.random.normal(k1, (batch, seq, emb_size), dtype=jnp.float32)
    decoder_hidden = jax.random.normal(k2, (batch, seq, emb_size), dtype=jnp.float32)
    emb_weight = jax.random.normal(k3, (num_buckets, heads_num), dtype=jnp.float32)

    # 1) small, bidirectional (module defaults) -- exact check.
    out = relative_position_embedding(encoder_hidden, decoder_hidden, emb_weight,
                                      bidirectional=True, num_buckets=num_buckets,
                                      max_distance=max_distance)
    out = jax.block_until_ready(out)
    assert out.shape == (1, heads_num, seq, seq), out.shape
    ref = _reference_values(seq, seq, emb_weight, True, num_buckets, max_distance)
    assert bool(jnp.allclose(out, ref, atol=1e-5)), "small bidirectional case mismatch"

    # 2) small, unidirectional branch -- exact check.
    out_uni = relative_position_embedding(encoder_hidden, decoder_hidden, emb_weight,
                                          bidirectional=False, num_buckets=num_buckets,
                                          max_distance=max_distance)
    out_uni = jax.block_until_ready(out_uni)
    ref_uni = _reference_values(seq, seq, emb_weight, False, num_buckets, max_distance)
    assert bool(jnp.allclose(out_uni, ref_uni, atol=1e-5)), "small unidirectional case mismatch"

    # 3) larger multi-tile case: 2x2 grid, Toeplitz band + rolled strip fill.
    q_len, k_len = 512, 1024
    enc_big = jax.random.normal(k1, (1, q_len, emb_size), dtype=jnp.float32)
    dec_big = jax.random.normal(k2, (1, k_len, emb_size), dtype=jnp.float32)
    out_big = relative_position_embedding(enc_big, dec_big, emb_weight,
                                          bidirectional=True, num_buckets=num_buckets,
                                          max_distance=max_distance)
    out_big = jax.block_until_ready(out_big)
    assert out_big.shape == (1, heads_num, q_len, k_len), out_big.shape
    _check(out_big, emb_weight, q_len, k_len, True, num_buckets, max_distance)

    # 4) odd (non-tile-aligned) shapes: partial edge blocks + the 2-block Q split for v7x.
    q_len, k_len = 50, 200
    enc_odd = jax.random.normal(k1, (1, q_len, emb_size), dtype=jnp.float32)
    dec_odd = jax.random.normal(k2, (1, k_len, emb_size), dtype=jnp.float32)
    out_odd = relative_position_embedding(enc_odd, dec_odd, emb_weight,
                                          bidirectional=True, num_buckets=num_buckets,
                                          max_distance=max_distance)
    out_odd = jax.block_until_ready(out_odd)
    assert out_odd.shape == (1, heads_num, q_len, k_len), out_odd.shape
    _check(out_odd, emb_weight, q_len, k_len, True, num_buckets, max_distance)

    print("KERNEL_OK")
</pallas_src>

<mosaic_0001>
module attributes {stable_mosaic.version = 11 : i64} {
  func.func @_rel_pos_bias_kernel(%arg0: i32, %arg1: i32, %arg2: memref<128xf32, #tpu.memory_space<smem>>, %arg3: memref<4x8x128xf32, #tpu.memory_space<vmem>>) attributes {dimension_semantics = [#tpu.dimension_semantics<parallel>, #tpu.dimension_semantics<parallel>], iteration_bounds = array<i64: 1, 1>, scalar_prefetch = 0 : i64, scratch_operands = 0 : i64, tpu.core_type = #tpu.core_type<tc>, window_params = [{transform_indices = @transform_0, window_bounds = array<i64: 128>}, {transform_indices = @transform_1, window_bounds = array<i64: 4, 8, 128>}]} {
    %c8_i32 = arith.constant 8 : i32
    %0 = arith.muli %arg0, %c8_i32 : i32
    %c128_i32 = arith.constant 128 : i32
    %1 = arith.muli %arg1, %c128_i32 : i32
    %2 = tpu.iota {dimensions = array<i32: 1>} : vector<8x128xi32>
    %3 = tpu.iota {dimensions = array<i32: 0>} : vector<8x128xi32>
    %4 = arith.subi %1, %0 : i32
    %c0_i32 = arith.constant 0 : i32
    %5 = arith.subi %4, %c0_i32 : i32
    %6 = vector.broadcast %5 : i32 to vector<8x128xi32>
    %7 = arith.addi %6, %2 : vector<8x128xi32>
    %8 = arith.subi %7, %3 : vector<8x128xi32>
    %c0_i32_0 = arith.constant 0 : i32
    %9 = vector.broadcast %c0_i32_0 : i32 to vector<8x128xi32>
    %10 = arith.cmpi sgt, %8, %9 : vector<8x128xi32>
    %c16_i32 = arith.constant 16 : i32
    %c0_i32_1 = arith.constant 0 : i32
    %11 = vector.broadcast %c16_i32 : i32 to vector<8x128xi32>
    %12 = vector.broadcast %c0_i32_1 : i32 to vector<8x128xi32>
    %13 = arith.select %10, %11, %12 : vector<8x128xi1>, vector<8x128xi32>
    %14 = math.absi %8 : vector<8x128xi32>
    %c8_i32_2 = arith.constant 8 : i32
    %15 = vector.broadcast %c8_i32_2 : i32 to vector<8x128xi32>
    %16 = arith.cmpi slt, %14, %15 : vector<8x128xi32>
    %17 = arith.sitofp %14 : vector<8x128xi32> to vector<8x128xf32>
    %cst = arith.constant 1.000000e+00 : f32
    %18 = vector.broadcast %cst : f32 to vector<8x128xf32>
    %19 = arith.maximumf %17, %18 : vector<8x128xf32>
    %cst_3 = arith.constant 8.000000e+00 : f32
    %20 = vector.broadcast %cst_3 : f32 to vector<8x128xf32>
    %21 = arith.divf %19, %20 : vector<8x128xf32>
    %22 = math.log %21 : vector<8x128xf32>
    %cst_4 = arith.constant 2.77258873 : f32
    %23 = vector.broadcast %cst_4 : f32 to vector<8x128xf32>
    %24 = arith.divf %22, %23 : vector<8x128xf32>
    %cst_5 = arith.constant 8.000000e+00 : f32
    %25 = vector.broadcast %cst_5 : f32 to vector<8x128xf32>
    %26 = arith.mulf %24, %25 : vector<8x128xf32>
    %27 = arith.fptosi %26 : vector<8x128xf32> to vector<8x128xi32>
    %c8_i32_6 = arith.constant 8 : i32
    %28 = vector.broadcast %c8_i32_6 : i32 to vector<8x128xi32>
    %29 = arith.addi %28, %27 : vector<8x128xi32>
    %c15_i32 = arith.constant 15 : i32
    %30 = vector.broadcast %c15_i32 : i32 to vector<8x128xi32>
    %31 = arith.minsi %29, %30 : vector<8x128xi32>
    %32 = arith.select %16, %14, %31 : vector<8x128xi1>, vector<8x128xi32>
    %33 = arith.addi %13, %32 : vector<8x128xi32>
    %cst_7 = arith.constant 0.000000e+00 : f32
    %34 = vector.broadcast %cst_7 : f32 to vector<8x128xf32>
    %cst_8 = arith.constant 0.000000e+00 : f32
    %35 = vector.broadcast %cst_8 : f32 to vector<8x128xf32>
    %cst_9 = arith.constant 0.000000e+00 : f32
    %36 = vector.broadcast %cst_9 : f32 to vector<8x128xf32>
    %cst_10 = arith.constant 0.000000e+00 : f32
    %37 = vector.broadcast %cst_10 : f32 to vector<8x128xf32>
    %c0_i32_11 = arith.constant 0 : i32
    %38 = vector.broadcast %c0_i32_11 : i32 to vector<8x128xi32>
    %39 = arith.cmpi eq, %33, %38 : vector<8x128xi32>
    %c0 = arith.constant 0 : index
    %40 = memref.load %arg2[%c0] : memref<128xf32, #tpu.memory_space<smem>>
    %41 = vector.broadcast %40 : f32 to vector<8x128xf32>
    %42 = arith.select %39, %41, %34 : vector<8x128xi1>, vector<8x128xf32>
    %c1 = arith.constant 1 : index
    %43 = memref.load %arg2[%c1] : memref<128xf32, #tpu.memory_space<smem>>
    %44 = vector.broadcast %43 : f32 to vector<8x128xf32>
    %45 = arith.select %39, %44, %35 : vector<8x128xi1>, vector<8x128xf32>
    %c2 = arith.constant 2 : index
    %46 = memref.load %arg2[%c2] : memref<128xf32, #tpu.memory_space<smem>>
    %47 = vector.broadcast %46 : f32 to vector<8x128xf32>
    %48 = arith.select %39, %47, %36 : vector<8x128xi1>, vector<8x128xf32>
    %c3 = arith.constant 3 : index
    %49 = memref.load %arg2[%c3] : memref<128xf32, #tpu.memory_space<smem>>
    %50 = vector.broadcast %49 : f32 to vector<8x128xf32>
    %51 = arith.select %39, %50, %37 : vector<8x128xi1>, vector<8x128xf32>
    %c1_i32 = arith.constant 1 : i32
    %52 = vector.broadcast %c1_i32 : i32 to vector<8x128xi32>
    %53 = arith.cmpi eq, %33, %52 : vector<8x128xi32>
    %c4 = arith.constant 4 : index
    %54 = memref.load %arg2[%c4] : memref<128xf32, #tpu.memory_space<smem>>
    %55 = vector.broadcast %54 : f32 to vector<8x128xf32>
    %56 = arith.select %53, %55, %42 : vector<8x128xi1>, vector<8x128xf32>
    %c5 = arith.constant 5 : index
    %57 = memref.load %arg2[%c5] : memref<128xf32, #tpu.memory_space<smem>>
    %58 = vector.broadcast %57 : f32 to vector<8x128xf32>
    %59 = arith.select %53, %58, %45 : vector<8x128xi1>, vector<8x128xf32>
    %c6 = arith.constant 6 : index
    %60 = memref.load %arg2[%c6] : memref<128xf32, #tpu.memory_space<smem>>
    %61 = vector.broadcast %60 : f32 to vector<8x128xf32>
    %62 = arith.select %53, %61, %48 : vector<8x128xi1>, vector<8x128xf32>
    %c7 = arith.constant 7 : index
    %63 = memref.load %arg2[%c7] : memref<128xf32, #tpu.memory_space<smem>>
    %64 = vector.broadcast %63 : f32 to vector<8x128xf32>
    %65 = arith.select %53, %64, %51 : vector<8x128xi1>, vector<8x128xf32>
    %c2_i32 = arith.constant 2 : i32
    %66 = vector.broadcast %c2_i32 : i32 to vector<8x128xi32>
    %67 = arith.cmpi eq, %33, %66 : vector<8x128xi32>
    %c8 = arith.constant 8 : index
    %68 = memref.load %arg2[%c8] : memref<128xf32, #tpu.memory_space<smem>>
    %69 = vector.broadcast %68 : f32 to vector<8x128xf32>
    %70 = arith.select %67, %69, %56 : vector<8x128xi1>, vector<8x128xf32>
    %c9 = arith.constant 9 : index
    %71 = memref.load %arg2[%c9] : memref<128xf32, #tpu.memory_space<smem>>
    %72 = vector.broadcast %71 : f32 to vector<8x128xf32>
    %73 = arith.select %67, %72, %59 : vector<8x128xi1>, vector<8x128xf32>
    %c10 = arith.constant 10 : index
    %74 = memref.load %arg2[%c10] : memref<128xf32, #tpu.memory_space<smem>>
    %75 = vector.broadcast %74 : f32 to vector<8x128xf32>
    %76 = arith.select %67, %75, %62 : vector<8x128xi1>, vector<8x128xf32>
    %c11 = arith.constant 11 : index
    %77 = memref.load %arg2[%c11] : memref<128xf32, #tpu.memory_space<smem>>
    %78 = vector.broadcast %77 : f32 to vector<8x128xf32>
    %79 = arith.select %67, %78, %65 : vector<8x128xi1>, vector<8x128xf32>
    %c3_i32 = arith.constant 3 : i32
    %80 = vector.broadcast %c3_i32 : i32 to vector<8x128xi32>
    %81 = arith.cmpi eq, %33, %80 : vector<8x128xi32>
    %c12 = arith.constant 12 : index
    %82 = memref.load %arg2[%c12] : memref<128xf32, #tpu.memory_space<smem>>
    %83 = vector.broadcast %82 : f32 to vector<8x128xf32>
    %84 = arith.select %81, %83, %70 : vector<8x128xi1>, vector<8x128xf32>
    %c13 = arith.constant 13 : index
    %85 = memref.load %arg2[%c13] : memref<128xf32, #tpu.memory_space<smem>>
    %86 = vector.broadcast %85 : f32 to vector<8x128xf32>
    %87 = arith.select %81, %86, %73 : vector<8x128xi1>, vector<8x128xf32>
    %c14 = arith.constant 14 : index
    %88 = memref.load %arg2[%c14] : memref<128xf32, #tpu.memory_space<smem>>
    %89 = vector.broadcast %88 : f32 to vector<8x128xf32>
    %90 = arith.select %81, %89, %76 : vector<8x128xi1>, vector<8x128xf32>
    %c15 = arith.constant 15 : index
    %91 = memref.load %arg2[%c15] : memref<128xf32, #tpu.memory_space<smem>>
    %92 = vector.broadcast %91 : f32 to vector<8x128xf32>
    %93 = arith.select %81, %92, %79 : vector<8x128xi1>, vector<8x128xf32>
    %c4_i32 = arith.constant 4 : i32
    %94 = vector.broadcast %c4_i32 : i32 to vector<8x128xi32>
    %95 = arith.cmpi eq, %33, %94 : vector<8x128xi32>
    %c16 = arith.constant 16 : index
    %96 = memref.load %arg2[%c16] : memref<128xf32, #tpu.memory_space<smem>>
    %97 = vector.broadcast %96 : f32 to vector<8x128xf32>
    %98 = arith.select %95, %97, %84 : vector<8x128xi1>, vector<8x128xf32>
    %c17 = arith.constant 17 : index
    %99 = memref.load %arg2[%c17] : memref<128xf32, #tpu.memory_space<smem>>
    %100 = vector.broadcast %99 : f32 to vector<8x128xf32>
    %101 = arith.select %95, %100, %87 : vector<8x128xi1>, vector<8x128xf32>
    %c18 = arith.constant 18 : index
    %102 = memref.load %arg2[%c18] : memref<128xf32, #tpu.memory_space<smem>>
    %103 = vector.broadcast %102 : f32 to vector<8x128xf32>
    %104 = arith.select %95, %103, %90 : vector<8x128xi1>, vector<8x128xf32>
    %c19 = arith.constant 19 : index
    %105 = memref.load %arg2[%c19] : memref<128xf32, #tpu.memory_space<smem>>
    %106 = vector.broadcast %105 : f32 to vector<8x128xf32>
    %107 = arith.select %95, %106, %93 : vector<8x128xi1>, vector<8x128xf32>
    %c5_i32 = arith.constant 5 : i32
    %108 = vector.broadcast %c5_i32 : i32 to vector<8x128xi32>
    %109 = arith.cmpi eq, %33, %108 : vector<8x128xi32>
    %c20 = arith.constant 20 : index
    %110 = memref.load %arg2[%c20] : memref<128xf32, #tpu.memory_space<smem>>
    %111 = vector.broadcast %110 : f32 to vector<8x128xf32>
    %112 = arith.select %109, %111, %98 : vector<8x128xi1>, vector<8x128xf32>
    %c21 = arith.constant 21 : index
    %113 = memref.load %arg2[%c21] : memref<128xf32, #tpu.memory_space<smem>>
    %114 = vector.broadcast %113 : f32 to vector<8x128xf32>
    %115 = arith.select %109, %114, %101 : vector<8x128xi1>, vector<8x128xf32>
    %c22 = arith.constant 22 : index
    %116 = memref.load %arg2[%c22] : memref<128xf32, #tpu.memory_space<smem>>
    %117 = vector.broadcast %116 : f32 to vector<8x128xf32>
    %118 = arith.select %109, %117, %104 : vector<8x128xi1>, vector<8x128xf32>
    %c23 = arith.constant 23 : index
    %119 = memref.load %arg2[%c23] : memref<128xf32, #tpu.memory_space<smem>>
    %120 = vector.broadcast %119 : f32 to vector<8x128xf32>
    %121 = arith.select %109, %120, %107 : vector<8x128xi1>, vector<8x128xf32>
    %c6_i32 = arith.constant 6 : i32
    %122 = vector.broadcast %c6_i32 : i32 to vector<8x128xi32>
    %123 = arith.cmpi eq, %33, %122 : vector<8x128xi32>
    %c24 = arith.constant 24 : index
    %124 = memref.load %arg2[%c24] : memref<128xf32, #tpu.memory_space<smem>>
    %125 = vector.broadcast %124 : f32 to vector<8x128xf32>
    %126 = arith.select %123, %125, %112 : vector<8x128xi1>, vector<8x128xf32>
    %c25 = arith.constant 25 : index
    %127 = memref.load %arg2[%c25] : memref<128xf32, #tpu.memory_space<smem>>
    %128 = vector.broadcast %127 : f32 to vector<8x128xf32>
    %129 = arith.select %123, %128, %115 : vector<8x128xi1>, vector<8x128xf32>
    %c26 = arith.constant 26 : index
    %130 = memref.load %arg2[%c26] : memref<128xf32, #tpu.memory_space<smem>>
    %131 = vector.broadcast %130 : f32 to vector<8x128xf32>
    %132 = arith.select %123, %131, %118 : vector<8x128xi1>, vector<8x128xf32>
    %c27 = arith.constant 27 : index
    %133 = memref.load %arg2[%c27] : memref<128xf32, #tpu.memory_space<smem>>
    %134 = vector.broadcast %133 : f32 to vector<8x128xf32>
    %135 = arith.select %123, %134, %121 : vector<8x128xi1>, vector<8x128xf32>
    %c7_i32 = arith.constant 7 : i32
    %136 = vector.broadcast %c7_i32 : i32 to vector<8x128xi32>
    %137 = arith.cmpi eq, %33, %136 : vector<8x128xi32>
    %c28 = arith.constant 28 : index
    %138 = memref.load %arg2[%c28] : memref<128xf32, #tpu.memory_space<smem>>
    %139 = vector.broadcast %138 : f32 to vector<8x128xf32>
    %140 = arith.select %137, %139, %126 : vector<8x128xi1>, vector<8x128xf32>
    %c29 = arith.constant 29 : index
    %141 = memref.load %arg2[%c29] : memref<128xf32, #tpu.memory_space<smem>>
    %142 = vector.broadcast %141 : f32 to vector<8x128xf32>
    %143 = arith.select %137, %142, %129 : vector<8x128xi1>, vector<8x128xf32>
    %c30 = arith.constant 30 : index
    %144 = memref.load %arg2[%c30] : memref<128xf32, #tpu.memory_space<smem>>
    %145 = vector.broadcast %144 : f32 to vector<8x128xf32>
    %146 = arith.select %137, %145, %132 : vector<8x128xi1>, vector<8x128xf32>
    %c31 = arith.constant 31 : index
    %147 = memref.load %arg2[%c31] : memref<128xf32, #tpu.memory_space<smem>>
    %148 = vector.broadcast %147 : f32 to vector<8x128xf32>
    %149 = arith.select %137, %148, %135 : vector<8x128xi1>, vector<8x128xf32>
    %c8_i32_12 = arith.constant 8 : i32
    %150 = vector.broadcast %c8_i32_12 : i32 to vector<8x128xi32>
    %151 = arith.cmpi eq, %33, %150 : vector<8x128xi32>
    %c32 = arith.constant 32 : index
    %152 = memref.load %arg2[%c32] : memref<128xf32, #tpu.memory_space<smem>>
    %153 = vector.broadcast %152 : f32 to vector<8x128xf32>
    %154 = arith.select %151, %153, %140 : vector<8x128xi1>, vector<8x128xf32>
    %c33 = arith.constant 33 : index
    %155 = memref.load %arg2[%c33] : memref<128xf32, #tpu.memory_space<smem>>
    %156 = vector.broadcast %155 : f32 to vector<8x128xf32>
    %157 = arith.select %151, %156, %143 : vector<8x128xi1>, vector<8x128xf32>
    %c34 = arith.constant 34 : index
    %158 = memref.load %arg2[%c34] : memref<128xf32, #tpu.memory_space<smem>>
    %159 = vector.broadcast %158 : f32 to vector<8x128xf32>
    %160 = arith.select %151, %159, %146 : vector<8x128xi1>, vector<8x128xf32>
    %c35 = arith.constant 35 : index
    %161 = memref.load %arg2[%c35] : memref<128xf32, #tpu.memory_space<smem>>
    %162 = vector.broadcast %161 : f32 to vector<8x128xf32>
    %163 = arith.select %151, %162, %149 : vector<8x128xi1>, vector<8x128xf32>
    %c9_i32 = arith.constant 9 : i32
    %164 = vector.broadcast %c9_i32 : i32 to vector<8x128xi32>
    %165 = arith.cmpi eq, %33, %164 : vector<8x128xi32>
    %c36 = arith.constant 36 : index
    %166 = memref.load %arg2[%c36] : memref<128xf32, #tpu.memory_space<smem>>
    %167 = vector.broadcast %166 : f32 to vector<8x128xf32>
    %168 = arith.select %165, %167, %154 : vector<8x128xi1>, vector<8x128xf32>
    %c37 = arith.constant 37 : index
    %169 = memref.load %arg2[%c37] : memref<128xf32, #tpu.memory_space<smem>>
    %170 = vector.broadcast %169 : f32 to vector<8x128xf32>
    %171 = arith.select %165, %170, %157 : vector<8x128xi1>, vector<8x128xf32>
    %c38 = arith.constant 38 : index
    %172 = memref.load %arg2[%c38] : memref<128xf32, #tpu.memory_space<smem>>
    %173 = vector.broadcast %172 : f32 to vector<8x128xf32>
    %174 = arith.select %165, %173, %160 : vector<8x128xi1>, vector<8x128xf32>
    %c39 = arith.constant 39 : index
    %175 = memref.load %arg2[%c39] : memref<128xf32, #tpu.memory_space<smem>>
    %176 = vector.broadcast %175 : f32 to vector<8x128xf32>
    %177 = arith.select %165, %176, %163 : vector<8x128xi1>, vector<8x128xf32>
    %c10_i32 = arith.constant 10 : i32
    %178 = vector.broadcast %c10_i32 : i32 to vector<8x128xi32>
    %179 = arith.cmpi eq, %33, %178 : vector<8x128xi32>
    %c40 = arith.constant 40 : index
    %180 = memref.load %arg2[%c40] : memref<128xf32, #tpu.memory_space<smem>>
    %181 = vector.broadcast %180 : f32 to vector<8x128xf32>
    %182 = arith.select %179, %181, %168 : vector<8x128xi1>, vector<8x128xf32>
    %c41 = arith.constant 41 : index
    %183 = memref.load %arg2[%c41] : memref<128xf32, #tpu.memory_space<smem>>
    %184 = vector.broadcast %183 : f32 to vector<8x128xf32>
    %185 = arith.select %179, %184, %171 : vector<8x128xi1>, vector<8x128xf32>
    %c42 = arith.constant 42 : index
    %186 = memref.load %arg2[%c42] : memref<128xf32, #tpu.memory_space<smem>>
    %187 = vector.broadcast %186 : f32 to vector<8x128xf32>
    %188 = arith.select %179, %187, %174 : vector<8x128xi1>, vector<8x128xf32>
    %c43 = arith.constant 43 : index
    %189 = memref.load %arg2[%c43] : memref<128xf32, #tpu.memory_space<smem>>
    %190 = vector.broadcast %189 : f32 to vector<8x128xf32>
    %191 = arith.select %179, %190, %177 : vector<8x128xi1>, vector<8x128xf32>
    %c11_i32 = arith.constant 11 : i32
    %192 = vector.broadcast %c11_i32 : i32 to vector<8x128xi32>
    %193 = arith.cmpi eq, %33, %192 : vector<8x128xi32>
    %c44 = arith.constant 44 : index
    %194 = memref.load %arg2[%c44] : memref<128xf32, #tpu.memory_space<smem>>
    %195 = vector.broadcast %194 : f32 to vector<8x128xf32>
    %196 = arith.select %193, %195, %182 : vector<8x128xi1>, vector<8x128xf32>
    %c45 = arith.constant 45 : index
    %197 = memref.load %arg2[%c45] : memref<128xf32, #tpu.memory_space<smem>>
    %198 = vector.broadcast %197 : f32 to vector<8x128xf32>
    %199 = arith.select %193, %198, %185 : vector<8x128xi1>, vector<8x128xf32>
    %c46 = arith.constant 46 : index
    %200 = memref.load %arg2[%c46] : memref<128xf32, #tpu.memory_space<smem>>
    %201 = vector.broadcast %200 : f32 to vector<8x128xf32>
    %202 = arith.select %193, %201, %188 : vector<8x128xi1>, vector<8x128xf32>
    %c47 = arith.constant 47 : index
    %203 = memref.load %arg2[%c47] : memref<128xf32, #tpu.memory_space<smem>>
    %204 = vector.broadcast %203 : f32 to vector<8x128xf32>
    %205 = arith.select %193, %204, %191 : vector<8x128xi1>, vector<8x128xf32>
    %c12_i32 = arith.constant 12 : i32
    %206 = vector.broadcast %c12_i32 : i32 to vector<8x128xi32>
    %207 = arith.cmpi eq, %33, %206 : vector<8x128xi32>
    %c48 = arith.constant 48 : index
    %208 = memref.load %arg2[%c48] : memref<128xf32, #tpu.memory_space<smem>>
    %209 = vector.broadcast %208 : f32 to vector<8x128xf32>
    %210 = arith.select %207, %209, %196 : vector<8x128xi1>, vector<8x128xf32>
    %c49 = arith.constant 49 : index
    %211 = memref.load %arg2[%c49] : memref<128xf32, #tpu.memory_space<smem>>
    %212 = vector.broadcast %211 : f32 to vector<8x128xf32>
    %213 = arith.select %207, %212, %199 : vector<8x128xi1>, vector<8x128xf32>
    %c50 = arith.constant 50 : index
    %214 = memref.load %arg2[%c50] : memref<128xf32, #tpu.memory_space<smem>>
    %215 = vector.broadcast %214 : f32 to vector<8x128xf32>
    %216 = arith.select %207, %215, %202 : vector<8x128xi1>, vector<8x128xf32>
    %c51 = arith.constant 51 : index
    %217 = memref.load %arg2[%c51] : memref<128xf32, #tpu.memory_space<smem>>
    %218 = vector.broadcast %217 : f32 to vector<8x128xf32>
    %219 = arith.select %207, %218, %205 : vector<8x128xi1>, vector<8x128xf32>
    %c13_i32 = arith.constant 13 : i32
    %220 = vector.broadcast %c13_i32 : i32 to vector<8x128xi32>
    %221 = arith.cmpi eq, %33, %220 : vector<8x128xi32>
    %c52 = arith.constant 52 : index
    %222 = memref.load %arg2[%c52] : memref<128xf32, #tpu.memory_space<smem>>
    %223 = vector.broadcast %222 : f32 to vector<8x128xf32>
    %224 = arith.select %221, %223, %210 : vector<8x128xi1>, vector<8x128xf32>
    %c53 = arith.constant 53 : index
    %225 = memref.load %arg2[%c53] : memref<128xf32, #tpu.memory_space<smem>>
    %226 = vector.broadcast %225 : f32 to vector<8x128xf32>
    %227 = arith.select %221, %226, %213 : vector<8x128xi1>, vector<8x128xf32>
    %c54 = arith.constant 54 : index
    %228 = memref.load %arg2[%c54] : memref<128xf32, #tpu.memory_space<smem>>
    %229 = vector.broadcast %228 : f32 to vector<8x128xf32>
    %230 = arith.select %221, %229, %216 : vector<8x128xi1>, vector<8x128xf32>
    %c55 = arith.constant 55 : index
    %231 = memref.load %arg2[%c55] : memref<128xf32, #tpu.memory_space<smem>>
    %232 = vector.broadcast %231 : f32 to vector<8x128xf32>
    %233 = arith.select %221, %232, %219 : vector<8x128xi1>, vector<8x128xf32>
    %c14_i32 = arith.constant 14 : i32
    %234 = vector.broadcast %c14_i32 : i32 to vector<8x128xi32>
    %235 = arith.cmpi eq, %33, %234 : vector<8x128xi32>
    %c56 = arith.constant 56 : index
    %236 = memref.load %arg2[%c56] : memref<128xf32, #tpu.memory_space<smem>>
    %237 = vector.broadcast %236 : f32 to vector<8x128xf32>
    %238 = arith.select %235, %237, %224 : vector<8x128xi1>, vector<8x128xf32>
    %c57 = arith.constant 57 : index
    %239 = memref.load %arg2[%c57] : memref<128xf32, #tpu.memory_space<smem>>
    %240 = vector.broadcast %239 : f32 to vector<8x128xf32>
    %241 = arith.select %235, %240, %227 : vector<8x128xi1>, vector<8x128xf32>
    %c58 = arith.constant 58 : index
    %242 = memref.load %arg2[%c58] : memref<128xf32, #tpu.memory_space<smem>>
    %243 = vector.broadcast %242 : f32 to vector<8x128xf32>
    %244 = arith.select %235, %243, %230 : vector<8x128xi1>, vector<8x128xf32>
    %c59 = arith.constant 59 : index
    %245 = memref.load %arg2[%c59] : memref<128xf32, #tpu.memory_space<smem>>
    %246 = vector.broadcast %245 : f32 to vector<8x128xf32>
    %247 = arith.select %235, %246, %233 : vector<8x128xi1>, vector<8x128xf32>
    %c15_i32_13 = arith.constant 15 : i32
    %248 = vector.broadcast %c15_i32_13 : i32 to vector<8x128xi32>
    %249 = arith.cmpi eq, %33, %248 : vector<8x128xi32>
    %c60 = arith.constant 60 : index
    %250 = memref.load %arg2[%c60] : memref<128xf32, #tpu.memory_space<smem>>
    %251 = vector.broadcast %250 : f32 to vector<8x128xf32>
    %252 = arith.select %249, %251, %238 : vector<8x128xi1>, vector<8x128xf32>
    %c61 = arith.constant 61 : index
    %253 = memref.load %arg2[%c61] : memref<128xf32, #tpu.memory_space<smem>>
    %254 = vector.broadcast %253 : f32 to vector<8x128xf32>
    %255 = arith.select %249, %254, %241 : vector<8x128xi1>, vector<8x128xf32>
    %c62 = arith.constant 62 : index
    %256 = memref.load %arg2[%c62] : memref<128xf32, #tpu.memory_space<smem>>
    %257 = vector.broadcast %256 : f32 to vector<8x128xf32>
    %258 = arith.select %249, %257, %244 : vector<8x128xi1>, vector<8x128xf32>
    %c63 = arith.constant 63 : index
    %259 = memref.load %arg2[%c63] : memref<128xf32, #tpu.memory_space<smem>>
    %260 = vector.broadcast %259 : f32 to vector<8x128xf32>
    %261 = arith.select %249, %260, %247 : vector<8x128xi1>, vector<8x128xf32>
    %c16_i32_14 = arith.constant 16 : i32
    %262 = vector.broadcast %c16_i32_14 : i32 to vector<8x128xi32>
    %263 = arith.cmpi eq, %33, %262 : vector<8x128xi32>
    %c64 = arith.constant 64 : index
    %264 = memref.load %arg2[%c64] : memref<128xf32, #tpu.memory_space<smem>>
    %265 = vector.broadcast %264 : f32 to vector<8x128xf32>
    %266 = arith.select %263, %265, %252 : vector<8x128xi1>, vector<8x128xf32>
    %c65 = arith.constant 65 : index
    %267 = memref.load %arg2[%c65] : memref<128xf32, #tpu.memory_space<smem>>
    %268 = vector.broadcast %267 : f32 to vector<8x128xf32>
    %269 = arith.select %263, %268, %255 : vector<8x128xi1>, vector<8x128xf32>
    %c66 = arith.constant 66 : index
    %270 = memref.load %arg2[%c66] : memref<128xf32, #tpu.memory_space<smem>>
    %271 = vector.broadcast %270 : f32 to vector<8x128xf32>
    %272 = arith.select %263, %271, %258 : vector<8x128xi1>, vector<8x128xf32>
    %c67 = arith.constant 67 : index
    %273 = memref.load %arg2[%c67] : memref<128xf32, #tpu.memory_space<smem>>
    %274 = vector.broadcast %273 : f32 to vector<8x128xf32>
    %275 = arith.select %263, %274, %261 : vector<8x128xi1>, vector<8x128xf32>
    %c17_i32 = arith.constant 17 : i32
    %276 = vector.broadcast %c17_i32 : i32 to vector<8x128xi32>
    %277 = arith.cmpi eq, %33, %276 : vector<8x128xi32>
    %c68 = arith.constant 68 : index
    %278 = memref.load %arg2[%c68] : memref<128xf32, #tpu.memory_space<smem>>
    %279 = vector.broadcast %278 : f32 to vector<8x128xf32>
    %280 = arith.select %277, %279, %266 : vector<8x128xi1>, vector<8x128xf32>
    %c69 = arith.constant 69 : index
    %281 = memref.load %arg2[%c69] : memref<128xf32, #tpu.memory_space<smem>>
    %282 = vector.broadcast %281 : f32 to vector<8x128xf32>
    %283 = arith.select %277, %282, %269 : vector<8x128xi1>, vector<8x128xf32>
    %c70 = arith.constant 70 : index
    %284 = memref.load %arg2[%c70] : memref<128xf32, #tpu.memory_space<smem>>
    %285 = vector.broadcast %284 : f32 to vector<8x128xf32>
    %286 = arith.select %277, %285, %272 : vector<8x128xi1>, vector<8x128xf32>
    %c71 = arith.constant 71 : index
    %287 = memref.load %arg2[%c71] : memref<128xf32, #tpu.memory_space<smem>>
    %288 = vector.broadcast %287 : f32 to vector<8x128xf32>
    %289 = arith.select %277, %288, %275 : vector<8x128xi1>, vector<8x128xf32>
    %c18_i32 = arith.constant 18 : i32
    %290 = vector.broadcast %c18_i32 : i32 to vector<8x128xi32>
    %291 = arith.cmpi eq, %33, %290 : vector<8x128xi32>
    %c72 = arith.constant 72 : index
    %292 = memref.load %arg2[%c72] : memref<128xf32, #tpu.memory_space<smem>>
    %293 = vector.broadcast %292 : f32 to vector<8x128xf32>
    %294 = arith.select %291, %293, %280 : vector<8x128xi1>, vector<8x128xf32>
    %c73 = arith.constant 73 : index
    %295 = memref.load %arg2[%c73] : memref<128xf32, #tpu.memory_space<smem>>
    %296 = vector.broadcast %295 : f32 to vector<8x128xf32>
    %297 = arith.select %291, %296, %283 : vector<8x128xi1>, vector<8x128xf32>
    %c74 = arith.constant 74 : index
    %298 = memref.load %arg2[%c74] : memref<128xf32, #tpu.memory_space<smem>>
    %299 = vector.broadcast %298 : f32 to vector<8x128xf32>
    %300 = arith.select %291, %299, %286 : vector<8x128xi1>, vector<8x128xf32>
    %c75 = arith.constant 75 : index
    %301 = memref.load %arg2[%c75] : memref<128xf32, #tpu.memory_space<smem>>
    %302 = vector.broadcast %301 : f32 to vector<8x128xf32>
    %303 = arith.select %291, %302, %289 : vector<8x128xi1>, vector<8x128xf32>
    %c19_i32 = arith.constant 19 : i32
    %304 = vector.broadcast %c19_i32 : i32 to vector<8x128xi32>
    %305 = arith.cmpi eq, %33, %304 : vector<8x128xi32>
    %c76 = arith.constant 76 : index
    %306 = memref.load %arg2[%c76] : memref<128xf32, #tpu.memory_space<smem>>
    %307 = vector.broadcast %306 : f32 to vector<8x128xf32>
    %308 = arith.select %305, %307, %294 : vector<8x128xi1>, vector<8x128xf32>
    %c77 = arith.constant 77 : index
    %309 = memref.load %arg2[%c77] : memref<128xf32, #tpu.memory_space<smem>>
    %310 = vector.broadcast %309 : f32 to vector<8x128xf32>
    %311 = arith.select %305, %310, %297 : vector<8x128xi1>, vector<8x128xf32>
    %c78 = arith.constant 78 : index
    %312 = memref.load %arg2[%c78] : memref<128xf32, #tpu.memory_space<smem>>
    %313 = vector.broadcast %312 : f32 to vector<8x128xf32>
    %314 = arith.select %305, %313, %300 : vector<8x128xi1>, vector<8x128xf32>
    %c79 = arith.constant 79 : index
    %315 = memref.load %arg2[%c79] : memref<128xf32, #tpu.memory_space<smem>>
    %316 = vector.broadcast %315 : f32 to vector<8x128xf32>
    %317 = arith.select %305, %316, %303 : vector<8x128xi1>, vector<8x128xf32>
    %c20_i32 = arith.constant 20 : i32
    %318 = vector.broadcast %c20_i32 : i32 to vector<8x128xi32>
    %319 = arith.cmpi eq, %33, %318 : vector<8x128xi32>
    %c80 = arith.constant 80 : index
    %320 = memref.load %arg2[%c80] : memref<128xf32, #tpu.memory_space<smem>>
    %321 = vector.broadcast %320 : f32 to vector<8x128xf32>
    %322 = arith.select %319, %321, %308 : vector<8x128xi1>, vector<8x128xf32>
    %c81 = arith.constant 81 : index
    %323 = memref.load %arg2[%c81] : memref<128xf32, #tpu.memory_space<smem>>
    %324 = vector.broadcast %323 : f32 to vector<8x128xf32>
    %325 = arith.select %319, %324, %311 : vector<8x128xi1>, vector<8x128xf32>
    %c82 = arith.constant 82 : index
    %326 = memref.load %arg2[%c82] : memref<128xf32, #tpu.memory_space<smem>>
    %327 = vector.broadcast %326 : f32 to vector<8x128xf32>
    %328 = arith.select %319, %327, %314 : vector<8x128xi1>, vector<8x128xf32>
    %c83 = arith.constant 83 : index
    %329 = memref.load %arg2[%c83] : memref<128xf32, #tpu.memory_space<smem>>
    %330 = vector.broadcast %329 : f32 to vector<8x128xf32>
    %331 = arith.select %319, %330, %317 : vector<8x128xi1>, vector<8x128xf32>
    %c21_i32 = arith.constant 21 : i32
    %332 = vector.broadcast %c21_i32 : i32 to vector<8x128xi32>
    %333 = arith.cmpi eq, %33, %332 : vector<8x128xi32>
    %c84 = arith.constant 84 : index
    %334 = memref.load %arg2[%c84] : memref<128xf32, #tpu.memory_space<smem>>
    %335 = vector.broadcast %334 : f32 to vector<8x128xf32>
    %336 = arith.select %333, %335, %322 : vector<8x128xi1>, vector<8x128xf32>
    %c85 = arith.constant 85 : index
    %337 = memref.load %arg2[%c85] : memref<128xf32, #tpu.memory_space<smem>>
    %338 = vector.broadcast %337 : f32 to vector<8x128xf32>
    %339 = arith.select %333, %338, %325 : vector<8x128xi1>, vector<8x128xf32>
    %c86 = arith.constant 86 : index
    %340 = memref.load %arg2[%c86] : memref<128xf32, #tpu.memory_space<smem>>
    %341 = vector.broadcast %340 : f32 to vector<8x128xf32>
    %342 = arith.select %333, %341, %328 : vector<8x128xi1>, vector<8x128xf32>
    %c87 = arith.constant 87 : index
    %343 = memref.load %arg2[%c87] : memref<128xf32, #tpu.memory_space<smem>>
    %344 = vector.broadcast %343 : f32 to vector<8x128xf32>
    %345 = arith.select %333, %344, %331 : vector<8x128xi1>, vector<8x128xf32>
    %c22_i32 = arith.constant 22 : i32
    %346 = vector.broadcast %c22_i32 : i32 to vector<8x128xi32>
    %347 = arith.cmpi eq, %33, %346 : vector<8x128xi32>
    %c88 = arith.constant 88 : index
    %348 = memref.load %arg2[%c88] : memref<128xf32, #tpu.memory_space<smem>>
    %349 = vector.broadcast %348 : f32 to vector<8x128xf32>
    %350 = arith.select %347, %349, %336 : vector<8x128xi1>, vector<8x128xf32>
    %c89 = arith.constant 89 : index
    %351 = memref.load %arg2[%c89] : memref<128xf32, #tpu.memory_space<smem>>
    %352 = vector.broadcast %351 : f32 to vector<8x128xf32>
    %353 = arith.select %347, %352, %339 : vector<8x128xi1>, vector<8x128xf32>
    %c90 = arith.constant 90 : index
    %354 = memref.load %arg2[%c90] : memref<128xf32, #tpu.memory_space<smem>>
    %355 = vector.broadcast %354 : f32 to vector<8x128xf32>
    %356 = arith.select %347, %355, %342 : vector<8x128xi1>, vector<8x128xf32>
    %c91 = arith.constant 91 : index
    %357 = memref.load %arg2[%c91] : memref<128xf32, #tpu.memory_space<smem>>
    %358 = vector.broadcast %357 : f32 to vector<8x128xf32>
    %359 = arith.select %347, %358, %345 : vector<8x128xi1>, vector<8x128xf32>
    %c23_i32 = arith.constant 23 : i32
    %360 = vector.broadcast %c23_i32 : i32 to vector<8x128xi32>
    %361 = arith.cmpi eq, %33, %360 : vector<8x128xi32>
    %c92 = arith.constant 92 : index
    %362 = memref.load %arg2[%c92] : memref<128xf32, #tpu.memory_space<smem>>
    %363 = vector.broadcast %362 : f32 to vector<8x128xf32>
    %364 = arith.select %361, %363, %350 : vector<8x128xi1>, vector<8x128xf32>
    %c93 = arith.constant 93 : index
    %365 = memref.load %arg2[%c93] : memref<128xf32, #tpu.memory_space<smem>>
    %366 = vector.broadcast %365 : f32 to vector<8x128xf32>
    %367 = arith.select %361, %366, %353 : vector<8x128xi1>, vector<8x128xf32>
    %c94 = arith.constant 94 : index
    %368 = memref.load %arg2[%c94] : memref<128xf32, #tpu.memory_space<smem>>
    %369 = vector.broadcast %368 : f32 to vector<8x128xf32>
    %370 = arith.select %361, %369, %356 : vector<8x128xi1>, vector<8x128xf32>
    %c95 = arith.constant 95 : index
    %371 = memref.load %arg2[%c95] : memref<128xf32, #tpu.memory_space<smem>>
    %372 = vector.broadcast %371 : f32 to vector<8x128xf32>
    %373 = arith.select %361, %372, %359 : vector<8x128xi1>, vector<8x128xf32>
    %c24_i32 = arith.constant 24 : i32
    %374 = vector.broadcast %c24_i32 : i32 to vector<8x128xi32>
    %375 = arith.cmpi eq, %33, %374 : vector<8x128xi32>
    %c96 = arith.constant 96 : index
    %376 = memref.load %arg2[%c96] : memref<128xf32, #tpu.memory_space<smem>>
    %377 = vector.broadcast %376 : f32 to vector<8x128xf32>
    %378 = arith.select %375, %377, %364 : vector<8x128xi1>, vector<8x128xf32>
    %c97 = arith.constant 97 : index
    %379 = memref.load %arg2[%c97] : memref<128xf32, #tpu.memory_space<smem>>
    %380 = vector.broadcast %379 : f32 to vector<8x128xf32>
    %381 = arith.select %375, %380, %367 : vector<8x128xi1>, vector<8x128xf32>
    %c98 = arith.constant 98 : index
    %382 = memref.load %arg2[%c98] : memref<128xf32, #tpu.memory_space<smem>>
    %383 = vector.broadcast %382 : f32 to vector<8x128xf32>
    %384 = arith.select %375, %383, %370 : vector<8x128xi1>, vector<8x128xf32>
    %c99 = arith.constant 99 : index
    %385 = memref.load %arg2[%c99] : memref<128xf32, #tpu.memory_space<smem>>
    %386 = vector.broadcast %385 : f32 to vector<8x128xf32>
    %387 = arith.select %375, %386, %373 : vector<8x128xi1>, vector<8x128xf32>
    %c25_i32 = arith.constant 25 : i32
    %388 = vector.broadcast %c25_i32 : i32 to vector<8x128xi32>
    %389 = arith.cmpi eq, %33, %388 : vector<8x128xi32>
    %c100 = arith.constant 100 : index
    %390 = memref.load %arg2[%c100] : memref<128xf32, #tpu.memory_space<smem>>
    %391 = vector.broadcast %390 : f32 to vector<8x128xf32>
    %392 = arith.select %389, %391, %378 : vector<8x128xi1>, vector<8x128xf32>
    %c101 = arith.constant 101 : index
    %393 = memref.load %arg2[%c101] : memref<128xf32, #tpu.memory_space<smem>>
    %394 = vector.broadcast %393 : f32 to vector<8x128xf32>
    %395 = arith.select %389, %394, %381 : vector<8x128xi1>, vector<8x128xf32>
    %c102 = arith.constant 102 : index
    %396 = memref.load %arg2[%c102] : memref<128xf32, #tpu.memory_space<smem>>
    %397 = vector.broadcast %396 : f32 to vector<8x128xf32>
    %398 = arith.select %389, %397, %384 : vector<8x128xi1>, vector<8x128xf32>
    %c103 = arith.constant 103 : index
    %399 = memref.load %arg2[%c103] : memref<128xf32, #tpu.memory_space<smem>>
    %400 = vector.broadcast %399 : f32 to vector<8x128xf32>
    %401 = arith.select %389, %400, %387 : vector<8x128xi1>, vector<8x128xf32>
    %c26_i32 = arith.constant 26 : i32
    %402 = vector.broadcast %c26_i32 : i32 to vector<8x128xi32>
    %403 = arith.cmpi eq, %33, %402 : vector<8x128xi32>
    %c104 = arith.constant 104 : index
    %404 = memref.load %arg2[%c104] : memref<128xf32, #tpu.memory_space<smem>>
    %405 = vector.broadcast %404 : f32 to vector<8x128xf32>
    %406 = arith.select %403, %405, %392 : vector<8x128xi1>, vector<8x128xf32>
    %c105 = arith.constant 105 : index
    %407 = memref.load %arg2[%c105] : memref<128xf32, #tpu.memory_space<smem>>
    %408 = vector.broadcast %407 : f32 to vector<8x128xf32>
    %409 = arith.select %403, %408, %395 : vector<8x128xi1>, vector<8x128xf32>
    %c106 = arith.constant 106 : index
    %410 = memref.load %arg2[%c106] : memref<128xf32, #tpu.memory_space<smem>>
    %411 = vector.broadcast %410 : f32 to vector<8x128xf32>
    %412 = arith.select %403, %411, %398 : vector<8x128xi1>, vector<8x128xf32>
    %c107 = arith.constant 107 : index
    %413 = memref.load %arg2[%c107] : memref<128xf32, #tpu.memory_space<smem>>
    %414 = vector.broadcast %413 : f32 to vector<8x128xf32>
    %415 = arith.select %403, %414, %401 : vector<8x128xi1>, vector<8x128xf32>
    %c27_i32 = arith.constant 27 : i32
    %416 = vector.broadcast %c27_i32 : i32 to vector<8x128xi32>
    %417 = arith.cmpi eq, %33, %416 : vector<8x128xi32>
    %c108 = arith.constant 108 : index
    %418 = memref.load %arg2[%c108] : memref<128xf32, #tpu.memory_space<smem>>
    %419 = vector.broadcast %418 : f32 to vector<8x128xf32>
    %420 = arith.select %417, %419, %406 : vector<8x128xi1>, vector<8x128xf32>
    %c109 = arith.constant 109 : index
    %421 = memref.load %arg2[%c109] : memref<128xf32, #tpu.memory_space<smem>>
    %422 = vector.broadcast %421 : f32 to vector<8x128xf32>
    %423 = arith.select %417, %422, %409 : vector<8x128xi1>, vector<8x128xf32>
    %c110 = arith.constant 110 : index
    %424 = memref.load %arg2[%c110] : memref<128xf32, #tpu.memory_space<smem>>
    %425 = vector.broadcast %424 : f32 to vector<8x128xf32>
    %426 = arith.select %417, %425, %412 : vector<8x128xi1>, vector<8x128xf32>
    %c111 = arith.constant 111 : index
    %427 = memref.load %arg2[%c111] : memref<128xf32, #tpu.memory_space<smem>>
    %428 = vector.broadcast %427 : f32 to vector<8x128xf32>
    %429 = arith.select %417, %428, %415 : vector<8x128xi1>, vector<8x128xf32>
    %c28_i32 = arith.constant 28 : i32
    %430 = vector.broadcast %c28_i32 : i32 to vector<8x128xi32>
    %431 = arith.cmpi eq, %33, %430 : vector<8x128xi32>
    %c112 = arith.constant 112 : index
    %432 = memref.load %arg2[%c112] : memref<128xf32, #tpu.memory_space<smem>>
    %433 = vector.broadcast %432 : f32 to vector<8x128xf32>
    %434 = arith.select %431, %433, %420 : vector<8x128xi1>, vector<8x128xf32>
    %c113 = arith.constant 113 : index
    %435 = memref.load %arg2[%c113] : memref<128xf32, #tpu.memory_space<smem>>
    %436 = vector.broadcast %435 : f32 to vector<8x128xf32>
    %437 = arith.select %431, %436, %423 : vector<8x128xi1>, vector<8x128xf32>
    %c114 = arith.constant 114 : index
    %438 = memref.load %arg2[%c114] : memref<128xf32, #tpu.memory_space<smem>>
    %439 = vector.broadcast %438 : f32 to vector<8x128xf32>
    %440 = arith.select %431, %439, %426 : vector<8x128xi1>, vector<8x128xf32>
    %c115 = arith.constant 115 : index
    %441 = memref.load %arg2[%c115] : memref<128xf32, #tpu.memory_space<smem>>
    %442 = vector.broadcast %441 : f32 to vector<8x128xf32>
    %443 = arith.select %431, %442, %429 : vector<8x128xi1>, vector<8x128xf32>
    %c29_i32 = arith.constant 29 : i32
    %444 = vector.broadcast %c29_i32 : i32 to vector<8x128xi32>
    %445 = arith.cmpi eq, %33, %444 : vector<8x128xi32>
    %c116 = arith.constant 116 : index
    %446 = memref.load %arg2[%c116] : memref<128xf32, #tpu.memory_space<smem>>
    %447 = vector.broadcast %446 : f32 to vector<8x128xf32>
    %448 = arith.select %445, %447, %434 : vector<8x128xi1>, vector<8x128xf32>
    %c117 = arith.constant 117 : index
    %449 = memref.load %arg2[%c117] : memref<128xf32, #tpu.memory_space<smem>>
    %450 = vector.broadcast %449 : f32 to vector<8x128xf32>
    %451 = arith.select %445, %450, %437 : vector<8x128xi1>, vector<8x128xf32>
    %c118 = arith.constant 118 : index
    %452 = memref.load %arg2[%c118] : memref<128xf32, #tpu.memory_space<smem>>
    %453 = vector.broadcast %452 : f32 to vector<8x128xf32>
    %454 = arith.select %445, %453, %440 : vector<8x128xi1>, vector<8x128xf32>
    %c119 = arith.constant 119 : index
    %455 = memref.load %arg2[%c119] : memref<128xf32, #tpu.memory_space<smem>>
    %456 = vector.broadcast %455 : f32 to vector<8x128xf32>
    %457 = arith.select %445, %456, %443 : vector<8x128xi1>, vector<8x128xf32>
    %c30_i32 = arith.constant 30 : i32
    %458 = vector.broadcast %c30_i32 : i32 to vector<8x128xi32>
    %459 = arith.cmpi eq, %33, %458 : vector<8x128xi32>
    %c120 = arith.constant 120 : index
    %460 = memref.load %arg2[%c120] : memref<128xf32, #tpu.memory_space<smem>>
    %461 = vector.broadcast %460 : f32 to vector<8x128xf32>
    %462 = arith.select %459, %461, %448 : vector<8x128xi1>, vector<8x128xf32>
    %c121 = arith.constant 121 : index
    %463 = memref.load %arg2[%c121] : memref<128xf32, #tpu.memory_space<smem>>
    %464 = vector.broadcast %463 : f32 to vector<8x128xf32>
    %465 = arith.select %459, %464, %451 : vector<8x128xi1>, vector<8x128xf32>
    %c122 = arith.constant 122 : index
    %466 = memref.load %arg2[%c122] : memref<128xf32, #tpu.memory_space<smem>>
    %467 = vector.broadcast %466 : f32 to vector<8x128xf32>
    %468 = arith.select %459, %467, %454 : vector<8x128xi1>, vector<8x128xf32>
    %c123 = arith.constant 123 : index
    %469 = memref.load %arg2[%c123] : memref<128xf32, #tpu.memory_space<smem>>
    %470 = vector.broadcast %469 : f32 to vector<8x128xf32>
    %471 = arith.select %459, %470, %457 : vector<8x128xi1>, vector<8x128xf32>
    %c31_i32 = arith.constant 31 : i32
    %472 = vector.broadcast %c31_i32 : i32 to vector<8x128xi32>
    %473 = arith.cmpi eq, %33, %472 : vector<8x128xi32>
    %c124 = arith.constant 124 : index
    %474 = memref.load %arg2[%c124] : memref<128xf32, #tpu.memory_space<smem>>
    %475 = vector.broadcast %474 : f32 to vector<8x128xf32>
    %476 = arith.select %473, %475, %462 : vector<8x128xi1>, vector<8x128xf32>
    %c125 = arith.constant 125 : index
    %477 = memref.load %arg2[%c125] : memref<128xf32, #tpu.memory_space<smem>>
    %478 = vector.broadcast %477 : f32 to vector<8x128xf32>
    %479 = arith.select %473, %478, %465 : vector<8x128xi1>, vector<8x128xf32>
    %c126 = arith.constant 126 : index
    %480 = memref.load %arg2[%c126] : memref<128xf32, #tpu.memory_space<smem>>
    %481 = vector.broadcast %480 : f32 to vector<8x128xf32>
    %482 = arith.select %473, %481, %468 : vector<8x128xi1>, vector<8x128xf32>
    %c127 = arith.constant 127 : index
    %483 = memref.load %arg2[%c127] : memref<128xf32, #tpu.memory_space<smem>>
    %484 = vector.broadcast %483 : f32 to vector<8x128xf32>
    %485 = arith.select %473, %484, %471 : vector<8x128xi1>, vector<8x128xf32>
    %c0_15 = arith.constant 0 : index
    %c0_16 = arith.constant 0 : index
    %c0_17 = arith.constant 0 : index
    %486 = vector.load %arg3[%c0_15, %c0_16, %c0_17] : memref<4x8x128xf32, #tpu.memory_space<vmem>>, vector<1x8x128xf32>
    %487 = vector.shape_cast %486 : vector<1x8x128xf32> to vector<8x128xf32>
    %488 = vector.shape_cast %476 : vector<8x128xf32> to vector<1x8x128xf32>
    tpu.vector_store %arg3[%c0_15, %c0_16, %c0_17], %488 {strides = array<i32>} : memref<4x8x128xf32, #tpu.memory_space<vmem>>, vector<1x8x128xf32>,
    %c1_18 = arith.constant 1 : index
    %c0_19 = arith.constant 0 : index
    %c0_20 = arith.constant 0 : index
    %489 = vector.load %arg3[%c1_18, %c0_19, %c0_20] : memref<4x8x128xf32, #tpu.memory_space<vmem>>, vector<1x8x128xf32>
    %490 = vector.shape_cast %489 : vector<1x8x128xf32> to vector<8x128xf32>
    %491 = vector.shape_cast %479 : vector<8x128xf32> to vector<1x8x128xf32>
    tpu.vector_store %arg3[%c1_18, %c0_19, %c0_20], %491 {strides = array<i32>} : memref<4x8x128xf32, #tpu.memory_space<vmem>>, vector<1x8x128xf32>,
    %c2_21 = arith.constant 2 : index
    %c0_22 = arith.constant 0 : index
    %c0_23 = arith.constant 0 : index
    %492 = vector.load %arg3[%c2_21, %c0_22, %c0_23] : memref<4x8x128xf32, #tpu.memory_space<vmem>>, vector<1x8x128xf32>
    %493 = vector.shape_cast %492 : vector<1x8x128xf32> to vector<8x128xf32>
    %494 = vector.shape_cast %482 : vector<8x128xf32> to vector<1x8x128xf32>
    tpu.vector_store %arg3[%c2_21, %c0_22, %c0_23], %494 {strides = array<i32>} : memref<4x8x128xf32, #tpu.memory_space<vmem>>, vector<1x8x128xf32>,
    %c3_24 = arith.constant 3 : index
    %c0_25 = arith.constant 0 : index
    %c0_26 = arith.constant 0 : index
    %495 = vector.load %arg3[%c3_24, %c0_25, %c0_26] : memref<4x8x128xf32, #tpu.memory_space<vmem>>, vector<1x8x128xf32>
    %496 = vector.shape_cast %495 : vector<1x8x128xf32> to vector<8x128xf32>
    %497 = vector.shape_cast %485 : vector<8x128xf32> to vector<1x8x128xf32>
    tpu.vector_store %arg3[%c3_24, %c0_25, %c0_26], %497 {strides = array<i32>} : memref<4x8x128xf32, #tpu.memory_space<vmem>>, vector<1x8x128xf32>,
    return
  }
  func.func @transform_0(%arg0: i32, %arg1: i32) -> i32 {
    %c0_i32 = arith.constant 0 : i32
    %c0_i32_0 = arith.constant 0 : i32
    return %c0_i32 : i32
  }
  func.func @transform_1(%arg0: i32, %arg1: i32) -> (i32, i32, i32) {
    %c0_i32 = arith.constant 0 : i32
    %c0_i32_0 = arith.constant 0 : i32
    return %c0_i32, %arg0, %arg1 : i32, i32, i32
  }
}

</mosaic_0001>

<bundles_post_ra>
// kernel: tpu_custom_call.1
= control target key start
LH: loop header
LB: loop body
LE: loop exit
PB: predicated region body
PF: predicated region fallthrough
CT: control target
= control target key end

     0   :  { %s1339_s0 = inlined_call_operand.hbm [shape: f32[128], index: 0, kind: input, shape index: {}]   ;;  %s1340_s1 = inlined_call_operand.hbm [shape: f32[4,8,8], index: 1, kind: output, shape index: {}]  }
   0x1   :  { %1413 = sst [smem:[#allocation72_spill]] %s1340_s1 }
   0x2   :  { %6 = vsyncpa [#allocation4], 0 }
   0x3   :  { %7 = vsyncpa [#allocation3], 0  ;;  %s628_s8 = scalar_lea.hbm %s1339_s0, 16 }
   0x4   :  { %p629_p0 = scmp.ne.s32.totalorder %s1339_s0, %s628_s8  ;;  %p632_p1 = scmp.lt.u32.totalorder %s628_s8, %s1339_s0 }
   0x6   :  { %p634_p2 = pnand %p632_p1, %p629_p0 }
   0x8   :  { %637 = shalt.err (!%p634_p2)
}
   0x9   :  { %s664_s13 = smov [#allocation2]  }
   0xa   :  { %15 = dma.hbm_to_smem %s1339_s0, 16, %s664_s13, [#allocation4]  }
   0xb   :  { %660 = dma.done.wait [#allocation4], 16  }
   0xc   :  { %661 = vsyncadd [#allocation4], 4294967280 }
   0xd   :  { %19 = sfence }
   0xe   :  { %v22_v0 = vlaneseq  ;;  %s691_s16 = sld [smem:[#allocation2]]  ;;  %s693_s17 = sld [smem:[#allocation2 + $0x1]]  ;;  %v665_v9 = vmov 0  }
   0xf   :  { %s695_s18 = sld [smem:[#allocation2 + $0x2]]  ;;  %s697_s19 = sld [smem:[#allocation2 + $0x3]] }
  0x10   :  { %v23_v1 = vand.u32 127, %v22_v0  ;;  %v25_v2 = vshrl.u32 %v22_v0, 7  ;;  %s699_s20 = sld [smem:[#allocation2 + $0x4]]  ;;  %s701_s21 = sld [smem:[#allocation2 + $0x5]] }
  0x11   :  { %s703_s22 = sld [smem:[#allocation2 + $0x6]]  ;;  %s705_s0 = sld [smem:[#allocation2 + $0x7]] }
  0x12   :  { %v29_v3 = vsub.s32 %v23_v1, %v25_v2  ;;  %s707_s23 = sld [smem:[#allocation2 + $0x8]]  ;;  %s709_s24 = sld [smem:[#allocation2 + $0x9]] }
  0x13   :  { %s711_s25 = sld [smem:[#allocation2 + $0xa]]  ;;  %s713_s26 = sld [smem:[#allocation2 + $0xb]] }
  0x14   :  { %1414 = sst [smem:[#allocation8_spill]] %s691_s16  ;;  %v33_v4 = vsub.s32 0, %v29_v3  ;;  %s715_s27 = sld [smem:[#allocation2 + $0xc]]  ;;  %vm30_vm0 = vcmp.gt.s32.totalorder %v29_v3, 0  ;;  %v53_v11 = vstv %s691_s16  ;;  %v56_v12 = vstv %s693_s17 }
  0x15   :  { %1415 = sst [smem:[#allocation9_spill]] %s693_s17  ;;  %s717_s28 = sld [smem:[#allocation2 + $0xd]]  ;;  %v782_v10 = vsel %vm30_vm0, 16, %v665_v9  ;;  %v59_v13 = vstv %s695_s18  ;;  %v62_v14 = vstv %s697_s19 }
  0x16   :  { %1416 = sst [smem:[#allocation10_spill]] %s695_s18  ;;  %s719_s29 = sld [smem:[#allocation2 + $0xe]]  ;;  %v723_v5 = vmin.u32 %v33_v4, %v29_v3  ;;  %v66_v15 = vstv %s699_s20  ;;  %v69_v16 = vstv %s701_s21 }
  0x17   :  { %1417 = sst [smem:[#allocation11_spill]] %s697_s19  ;;  %s721_s30 = sld [smem:[#allocation2 + $0xf]]  ;;  %v72_v17 = vstv %s703_s22  ;;  %v75_v18 = vstv %s705_s0 }
  0x18   :  { %1418 = sst [smem:[#allocation12_spill]] %s699_s20  ;;  %s725_s2 = sld [smem:[#allocation2 + $0x10]]  ;;  %v36_v6 = vcvt.s32.f32 %v723_v5  ;;  %v79_v19 = vstv %s707_s23  ;;  %v82_v20 = vstv %s709_s24  ;;  %vm35_vm1 = vcmp.lt.s32.totalorder %v723_v5, 8 }
  0x19   :  { %1419 = sst [smem:[#allocation13_spill]] %s701_s21  ;;  %s727_s3 = sld [smem:[#allocation2 + $0x11]]  ;;  %v85_v21 = vstv %s711_s25  ;;  %v88_v22 = vstv %s713_s26 }
  0x1a   :  { %1420 = sst [smem:[#allocation14_spill]] %s703_s22  ;;  %s729_s4 = sld [smem:[#allocation2 + $0x12]]  ;;  %v37_v7 = vmax.f32 %v36_v6, 1.0  ;;  %v92_v23 = vstv %s715_s27 }
  0x1b   :  { %1421 = sst [smem:[#allocation15_spill]] %s705_s0  ;;  %s731_s5 = sld [smem:[#allocation2 + $0x13]]  ;;  %v95_v24 = vstv %s717_s28 }
  0x1c   :  { %1422 = sst [smem:[#allocation16_spill]] %s707_s23  ;;  %s734_s6 = sld [smem:[#allocation2 + $0x14]]  ;;  %v39_v8 = vmul.f32 0.125, %v37_v7  ;;  %v98_v26 = vstv %s719_s29 }
  0x1d   :  { %1423 = sst [smem:[#allocation17_spill]] %s709_s24  ;;  %s736_s7 = sld [smem:[#allocation2 + $0x15]]  ;;  %v101_v27 = vstv %s721_s30 }
  0x1e   :  { %1424 = sst [smem:[#allocation18_spill]] %s711_s25  ;;  %s738_s8 = sld [smem:[#allocation2 + $0x16]]  ;;  %626 = vlog2.f32 %v39_v8  ;;  %v105_v28 = vstv %s725_s2 }
  0x1f   :  { %1425 = sst [smem:[#allocation19_spill]] %s713_s26  ;;  %s740_s9 = sld [smem:[#allocation2 + $0x17]]  ;;  %v108_v29 = vstv %s727_s3 }
  0x20   :  { %1426 = sst [smem:[#allocation20_spill]] %s715_s27  ;;  %s742_s10 = sld [smem:[#allocation2 + $0x18]]  ;;  %v111_v31 = vstv %s729_s4 }
  0x21   :  { %1427 = sst [smem:[#allocation21_spill]] %s717_s28  ;;  %s744_s11 = sld [smem:[#allocation2 + $0x19]]  ;;  %v114_v32 = vstv %s731_s5 }
  0x22   :  { %1428 = sst [smem:[#allocation22_spill]] %s719_s29  ;;  %s746_s12 = sld [smem:[#allocation2 + $0x1a]]  ;;  %v118_v33 = vstv %s734_s6 }
  0x23   :  { %1429 = sst [smem:[#allocation23_spill]] %s721_s30  ;;  %s748_s13 = sld [smem:[#allocation2 + $0x1b]] }
  0x24   :  { %1430 = sst [smem:[#allocation24_spill]] %s725_s2  ;;  %s750_s14 = sld [smem:[#allocation2 + $0x1c]]  ;;  %v124_v35 = vstv %s738_s8 }
  0x25   :  { %1431 = sst [smem:[#allocation25_spill]] %s727_s3  ;;  %s752_s15 = sld [smem:[#allocation2 + $0x1d]] }
  0x26   :  { %1432 = sst [smem:[#allocation26_spill]] %s729_s4  ;;  %s754_s1 = sld [smem:[#allocation2 + $0x1e]] }
  0x27   :  { %1433 = sst [smem:[#allocation27_spill]] %s731_s5  ;;  %s802_s17 = sld [smem:[#allocation2 + $0x30]] }
  0x28   :  { %1434 = sst [smem:[#allocation28_spill]] %s734_s6  ;;  %s804_s16 = sld [smem:[#allocation2 + $0x31]]  ;;  %v627_v25 = vpop.eup %626 }
  0x29   :  { %1435 = sst [smem:[#allocation29_spill]] %s736_s7  ;;  %s756_s7 = sld [smem:[#allocation2 + $0x1f]]  ;;  %v41_v30 = vmul.f32 0.6931472, %v627_v25 }
  0x2a   :  { %1436 = sst [smem:[#allocation30_spill]] %s738_s8  ;;  %s1462_s21 = sld [smem:[#allocation29_spill]]  ;;  %v144_v42 = vstv %s750_s14 }
  0x2b   :  { %1437 = sst [smem:[#allocation31_spill]] %s740_s9  ;;  %s758_s9 = sld [smem:[#allocation2 + $0x20]]  ;;  %v43_v38 = vmul.f32 0.36067376, %v41_v30 }
  0x2c   :  { %1438 = sst [smem:[#allocation32_spill]] %s742_s10  ;;  %s760_s10 = sld [smem:[#allocation2 + $0x21]] }
  0x2d   :  { %1439 = sst [smem:[#allocation33_spill]] %s744_s11  ;;  %s762_s11 = sld [smem:[#allocation2 + $0x22]]  ;;  %v44_v46 = vmul.f32 8.0, %v43_v38  ;;  %v209_v1 = vstv %s802_s17 }
  0x2e   :  { %1440 = sst [smem:[#allocation34_spill]] %s746_s12  ;;  %s764_s12 = sld [smem:[#allocation2 + $0x23]]  ;;  %v212_v2 = vstv %s804_s16 }
  0x2f   :  { %1441 = sst [smem:[#allocation35_spill]] %s748_s13  ;;  %s766_s13 = sld [smem:[#allocation2 + $0x24]]  ;;  %v619_v54 = vtrunc.f32 %v44_v46 }
  0x30   :  { %1442 = sst [smem:[#allocation36_spill]] %s750_s14  ;;  %s810_s20 = sld [smem:[#allocation2 + $0x32]]  ;;  %v121_v34 = vstv %s1462_s21 }
  0x31   :  { %1443 = sst [smem:[#allocation37_spill]] %s752_s15  ;;  %s812_s22 = sld [smem:[#allocation2 + $0x33]]  ;;  %v620_v62 = vcvt.f32.s32 %v619_v54 }
  0x32   :  { %1444 = sst [smem:[#allocation38_spill]] %s754_s1  ;;  %s768_s15 = sld [smem:[#allocation2 + $0x25]] }
  0x33   :  { %1445 = sst [smem:[#allocation39_spill]] %s756_s7  ;;  %s770_s7 = sld [smem:[#allocation2 + $0x26]]  ;;  %v163_v49 = vstv %s762_s11  ;;  %v46_v7 = vadd.s32 8, %v620_v62 }
  0x34   :  { %1446 = sst [smem:[#allocation40_spill]] %s758_s9  ;;  %s772_s1 = sld [smem:[#allocation2 + $0x27]] }
  0x35   :  { %1447 = sst [smem:[#allocation41_spill]] %s760_s10  ;;  %s774_s9 = sld [smem:[#allocation2 + $0x28]]  ;;  %vm47_vm2 = vcmp.lt.s32.totalorder %v46_v7, 15 }
  0x36   :  { %1448 = sst [smem:[#allocation42_spill]] %s762_s11  ;;  %s776_s10 = sld [smem:[#allocation2 + $0x29]]  ;;  %v48_v8 = vsel %vm47_vm2, %v46_v7, 15 }
  0x37   :  { %1449 = sst [smem:[#allocation43_spill]] %s764_s12  ;;  %s778_s12 = sld [smem:[#allocation2 + $0x2a]]  ;;  %v49_v38 = vsel %vm35_vm1, %v723_v5, %v48_v8 }
  0x38   :  { %1450 = sst [smem:[#allocation44_spill]] %s766_s13  ;;  %s780_s13 = sld [smem:[#allocation2 + $0x2b]]  ;;  %v173_v52 = vstv %s768_s15  ;;  %v922_v9 = vadd.s32 %v49_v38, %v782_v10 }
  0x39   :  { %1451 = sst [smem:[#allocation45_spill]] %s768_s15  ;;  %s1465_s0 = sld [smem:[#allocation31_spill]]  ;;  %v176_v53 = vstv %s770_s7 }
  0x3a   :  { %1452 = sst [smem:[#allocation46_spill]] %s770_s7  ;;  %s1466_s24 = sld [smem:[#allocation32_spill]]  ;;  %vm51_vm3 = vcmp.eq.s32.totalorder %v922_v9, 0  ;;  %vm64_vm4 = vcmp.eq.s32.totalorder %v922_v9, 1  ;;  %vm77_vm5 = vcmp.eq.s32.totalorder %v922_v9, 2  ;;  %vm90_vm6 = vcmp.eq.s32.totalorder %v922_v9, 3 }
  0x3b   :  { %1453 = sst [smem:[#allocation47_spill]] %s772_s1  ;;  %s786_s1 = sld [smem:[#allocation2 + $0x2c]]  ;;  %v54_v10 = vsel %vm51_vm3, %v53_v11, 0.0  ;;  %v57_v38 = vsel %vm51_vm3, %v56_v12, 0.0  ;;  %v60_v8 = vsel %vm51_vm3, %v59_v13, 0.0  ;;  %v63_v54 = vsel %vm51_vm3, %v62_v14, 0.0 }
  0x3c   :  { %1454 = sst [smem:[#allocation48_spill]] %s774_s9  ;;  %s788_s9 = sld [smem:[#allocation2 + $0x2d]]  ;;  %v186_v57 = vstv %s776_s10  ;;  %v67_v5 = vsel %vm64_vm4, %v66_v15, %v54_v10  ;;  %v70_v4 = vsel %vm64_vm4, %v69_v16, %v57_v38  ;;  %v73_v3 = vsel %vm64_vm4, %v72_v17, %v60_v8 }
  0x3d   :  { %1455 = sst [smem:[#allocation49_spill]] %s776_s10  ;;  %s818_s19 = sld [smem:[#allocation2 + $0x34]]  ;;  %v76_v7 = vsel %vm64_vm4, %v75_v18, %v63_v54  ;;  %v80_v11 = vsel %vm77_vm5, %v79_v19, %v67_v5  ;;  %v83_v12 = vsel %vm77_vm5, %v82_v20, %v70_v4  ;;  %v86_v13 = vsel %vm77_vm5, %v85_v21, %v73_v3 }
  0x3e   :  { %1456 = sst [smem:[#allocation50_spill]] %s778_s12  ;;  %s796_s12 = sld [smem:[#allocation2 + $0x2f]]  ;;  %v89_v14 = vsel %vm77_vm5, %v88_v22, %v76_v7  ;;  %v93_v15 = vsel %vm90_vm6, %v92_v23, %v80_v11  ;;  %v96_v16 = vsel %vm90_vm6, %v95_v24, %v83_v12  ;;  %v99_v17 = vsel %vm90_vm6, %v98_v26, %v86_v13 }
  0x3f   :  { %1457 = sst [smem:[#allocation51_spill]] %s780_s13  ;;  %s794_s13 = sld [smem:[#allocation2 + $0x2e]]  ;;  %v127_v36 = vstv %s1465_s0  ;;  %v102_v18 = vsel %vm90_vm6, %v101_v27, %v89_v14  ;;  %vm103_vm7 = vcmp.eq.s32.totalorder %v922_v9, 4  ;;  %vm116_vm8 = vcmp.eq.s32.totalorder %v922_v9, 5 }
  0x40   :  { %1461 = sst [smem:[#allocation55_spill]] %s802_s17  ;;  %s1467_s23 = sld [smem:[#allocation33_spill]]  ;;  %v131_v37 = vstv %s1466_s24  ;;  %vm129_vm9 = vcmp.eq.s32.totalorder %v922_v9, 6  ;;  %vm142_vm10 = vcmp.eq.s32.totalorder %v922_v9, 7  ;;  %v106_v19 = vsel %vm103_vm7, %v105_v28, %v93_v15 }
  0x41   :  { %1458 = sst [smem:[#allocation52_spill]] %s786_s1  ;;  %s1468_s25 = sld [smem:[#allocation34_spill]]  ;;  %v196_v60 = vstv %s786_s1  ;;  %v109_v20 = vsel %vm103_vm7, %v108_v29, %v96_v16  ;;  %v112_v21 = vsel %vm103_vm7, %v111_v31, %v99_v17  ;;  %v115_v22 = vsel %vm103_vm7, %v114_v32, %v102_v18 }
  0x42   :  { %1459 = sst [smem:[#allocation53_spill]] %s788_s9  ;;  %s1470_s28 = sld [smem:[#allocation35_spill]]  ;;  %v199_v61 = vstv %s788_s9  ;;  %v119_v23 = vsel %vm116_vm8, %v118_v33, %v106_v19  ;;  %v122_v24 = vsel %vm116_vm8, %v121_v34, %v109_v20  ;;  %v125_v26 = vsel %vm116_vm8, %v124_v35, %v112_v21 }
  0x43   :  { %1463 = sst [smem:[#allocation56_spill]] %s810_s20  ;;  %s820_s26 = sld [smem:[#allocation2 + $0x35]]  ;;  %v128_v27 = vsel %vm116_vm8, %v127_v36, %v115_v22  ;;  %v132_v28 = vsel %vm129_vm9, %v131_v37, %v119_v23  ;;  %vm155_vm11 = vcmp.eq.s32.totalorder %v922_v9, 8  ;;  %vm168_vm12 = vcmp.eq.s32.totalorder %v922_v9, 9 }
  0x44   :  { %1464 = sst [smem:[#allocation57_spill]] %s812_s22  ;;  %s825_s27 = sld [smem:[#allocation2 + $0x36]]  ;;  %v205_v0 = vstv %s796_s12  ;;  %v145_v33 = vsel %vm142_vm10, %v144_v42, %v132_v28  ;;  %vm181_vm13 = vcmp.eq.s32.totalorder %v922_v9, 10  ;;  %vm194_vm14 = vcmp.eq.s32.totalorder %v922_v9, 11 }
  0x45   :  { %1460 = sst [smem:[#allocation54_spill]] %s794_s13  ;;  %s1471_s18 = sld [smem:[#allocation37_spill]]  ;;  %v202_v63 = vstv %s794_s13  ;;  %vm207_vm15 = vcmp.eq.s32.totalorder %v922_v9, 12  ;;  %vm220_vm0 = vcmp.eq.s32.totalorder %v922_v9, 13  ;;  %vm233_vm1 = vcmp.eq.s32.totalorder %v922_v9, 14 }
  0x46   :  { %s827_s22 = sld [smem:[#allocation2 + $0x37]]  ;;  %s1473_s30 = sld [smem:[#allocation38_spill]]  ;;  %v134_v39 = vstv %s1467_s23  ;;  %vm246_vm2 = vcmp.eq.s32.totalorder %v922_v9, 15  ;;  %vm259_vm3 = vcmp.eq.s32.totalorder %v922_v9, 16  ;;  %vm272_vm4 = vcmp.eq.s32.totalorder %v922_v9, 17 }
  0x47   :  { %s1474_s3 = sld [smem:[#allocation39_spill]]  ;;  %s833_s2 = sld [smem:[#allocation2 + $0x38]]  ;;  %v137_v40 = vstv %s1468_s25  ;;  %v135_v29 = vsel %vm129_vm9, %v134_v39, %v122_v24  ;;  %vm285_vm5 = vcmp.eq.s32.totalorder %v922_v9, 18  ;;  %vm298_vm6 = vcmp.eq.s32.totalorder %v922_v9, 19 }
  0x48   :  { %s1476_s29 = sld [smem:[#allocation40_spill]]  ;;  %s1478_s4 = sld [smem:[#allocation41_spill]]  ;;  %v140_v41 = vstv %s1470_s28  ;;  %v138_v31 = vsel %vm129_vm9, %v137_v40, %v125_v26  ;;  %vm311_vm7 = vcmp.eq.s32.totalorder %v922_v9, 20  ;;  %vm324_vm8 = vcmp.eq.s32.totalorder %v922_v9, 21 }
  0x49   :  { %1469 = sst [smem:[#allocation58_spill]] %s820_s26  ;;  %s835_s26 = sld [smem:[#allocation2 + $0x39]]  ;;  %v141_v32 = vsel %vm129_vm9, %v140_v41, %v128_v27  ;;  %vm337_vm9 = vcmp.eq.s32.totalorder %v922_v9, 22 }
  0x4a   :  { %s1479_s6 = sld [smem:[#allocation43_spill]]  ;;  %s840_s5 = sld [smem:[#allocation2 + $0x3a]]  ;;  %v1563_v54 = vstv %s825_s27 }
  0x4b   :  { %s842_s21 = sld [smem:[#allocation2 + $0x3b]]  ;;  %v147_v43 = vstv %s1471_s18  ;;  %s1483_s24 = sld [smem:[#allocation47_spill]] }
  0x4c   :  { %1472 = sst [smem:[#allocation37_spill]] %s827_s22  ;;  %s1481_s22 = sld [smem:[#allocation44_spill]]  ;;  %v150_v44 = vstv %s1473_s30  ;;  %v148_v34 = vsel %vm142_vm10, %v147_v43, %v135_v29 }
  0x4d   :  { %1475 = sst [smem:[#allocation59_spill]] %s833_s2  ;;  %v153_v45 = vstv %s1474_s3  ;;  %s849_s0 = sld [smem:[#allocation2 + $0x3c]]  ;;  %v151_v35 = vsel %vm142_vm10, %v150_v44, %v138_v31 }
  0x4e   :  { %s1485_s23 = sld [smem:[#allocation48_spill]]  ;;  %s851_s25 = sld [smem:[#allocation2 + $0x3d]]  ;;  %v157_v47 = vstv %s1476_s29  ;;  %v160_v48 = vstv %s1478_s4  ;;  %v154_v36 = vsel %vm142_vm10, %v153_v45, %v141_v32  ;;  %v164_v40 = vsel %vm155_vm11, %v163_v49, %v151_v35 }
  0x4f   :  { %1477 = sst [smem:[#allocation40_spill]] %s835_s26  ;;  %s1487_s28 = sld [smem:[#allocation50_spill]]  ;;  %v158_v37 = vsel %vm155_vm11, %v157_v47, %v145_v33  ;;  %v161_v39 = vsel %vm155_vm11, %v160_v48, %v148_v34  ;;  %v177_v44 = vsel %vm168_vm12, %v176_v53, %v164_v40  ;;  %vm350_vm10 = vcmp.eq.s32.totalorder %v922_v9, 23 }
  0x50   :  { %1480 = sst [smem:[#allocation60_spill]] %s840_s5  ;;  %s1488_s8 = sld [smem:[#allocation51_spill]]  ;;  %v166_v50 = vstv %s1479_s6  ;;  %v174_v43 = vsel %vm168_vm12, %v173_v52, %v161_v39 }
  0x51   :  { %1482 = sst [smem:[#allocation61_spill]] %s842_s21  ;;  %s856_s21 = sld [smem:[#allocation2 + $0x3e]]  ;;  %v179_v55 = vstv %s1483_s24  ;;  %v167_v41 = vsel %vm155_vm11, %v166_v50, %v154_v36  ;;  %v187_v47 = vsel %vm181_vm13, %v186_v57, %v174_v43  ;;  %vm363_vm11 = vcmp.eq.s32.totalorder %v922_v9, 24 }
  0x52   :  { %s858_s14 = sld [smem:[#allocation2 + $0x3f]]  ;;  %v170_v51 = vstv %s1481_s22  ;;  %s864_s3 = sld [smem:[#allocation2 + $0x40]]  ;;  %v180_v45 = vsel %vm168_vm12, %v179_v55, %v167_v41 }
  0x53   :  { %1484 = sst [smem:[#allocation47_spill]] %s849_s0  ;;  %s866_s30 = sld [smem:[#allocation2 + $0x41]]  ;;  %v248_v62 = vstv %s849_s0  ;;  %v171_v42 = vsel %vm168_vm12, %v170_v51, %v158_v37  ;;  %v200_v51 = vsel %vm194_vm14, %v199_v61, %v187_v47  ;;  %v1561_v61 = vstv %s818_s19 }
  0x54   :  { %1486 = sst [smem:[#allocation62_spill]] %s851_s25  ;;  %v183_v56 = vstv %s1485_s23  ;;  %s871_s11 = sld [smem:[#allocation2 + $0x42]]  ;;  %vm376_vm12 = vcmp.eq.s32.totalorder %v922_v9, 25 }
  0x55   :  { %s1494_s4 = sld [smem:[#allocation57_spill]]  ;;  %s873_s6 = sld [smem:[#allocation2 + $0x43]]  ;;  %v189_v58 = vstv %s1487_s28  ;;  %v184_v3 = vsel %vm181_vm13, %v183_v56, %v171_v42  ;;  %v213_v56 = vsel %vm207_vm15, %v212_v2, %v200_v51 }
  0x56   :  { %v192_v59 = vstv %s1488_s8  ;;  %s1496_s7 = sld [smem:[#allocation58_spill]]  ;;  %s879_s15 = sld [smem:[#allocation2 + $0x44]]  ;;  %v190_v48 = vsel %vm181_vm13, %v189_v58, %v177_v44  ;;  %v197_v50 = vsel %vm194_vm14, %v196_v60, %v184_v3 }
  0x57   :  { %1489 = sst [smem:[#allocation51_spill]] %s856_s21  ;;  %s881_s22 = sld [smem:[#allocation2 + $0x45]]  ;;  %v193_v49 = vsel %vm181_vm13, %v192_v59, %v180_v45  ;;  %v203_v52 = vsel %vm194_vm14, %v202_v63, %v190_v48  ;;  %v210_v55 = vsel %vm207_vm15, %v209_v1, %v197_v50  ;;  %vm389_vm13 = vcmp.eq.s32.totalorder %v922_v9, 26 }
  0x58   :  { %1490 = sst [smem:[#allocation63_spill]] %s858_s14  ;;  %s1499_s23 = sld [smem:[#allocation37_spill]]  ;;  %v257_v6 = vstv %s858_s14  ;;  %v206_v53 = vsel %vm194_vm14, %v205_v0, %v193_v49  ;;  %v223_v63 = vsel %vm220_vm0, %v1561_v61, %v210_v55  ;;  %vm402_vm14 = vcmp.eq.s32.totalorder %v922_v9, 27 }
  0x59   :  { %1491 = sst [smem:[#allocation64_spill]] %s864_s3  ;;  %s886_s10 = sld [smem:[#allocation2 + $0x46]] }
  0x5a   :  { %1492 = sst [smem:[#allocation65_spill]] %s866_s30  ;;  %s888_s28 = sld [smem:[#allocation2 + $0x47]]  ;;  %v267_v46 = vstv %s871_s11 }
  0x5b   :  { %1493 = sst [smem:[#allocation66_spill]] %s871_s11  ;;  %s894_s9 = sld [smem:[#allocation2 + $0x48]]  ;;  %v1557_v59 = vstv %s1494_s4 }
  0x5c   :  { %1495 = sst [smem:[#allocation57_spill]] %s873_s6  ;;  %s901_s17 = sld [smem:[#allocation2 + $0x4a]]  ;;  %v274_v30 = vstv %s879_s15  ;;  %v219_v60 = vsel %vm207_vm15, %v1557_v59, %v206_v53  ;;  %v1562_v0 = vstv %s1496_s7 }
  0x5d   :  { %1497 = sst [smem:[#allocation58_spill]] %s879_s15  ;;  %s896_s13 = sld [smem:[#allocation2 + $0x49]]  ;;  %v277_v25 = vstv %s881_s22  ;;  %v226_v4 = vsel %vm220_vm0, %v1562_v0, %v213_v56 }
  0x5e   :  { %1498 = sst [smem:[#allocation67_spill]] %s881_s22  ;;  %s1550_s29 = sld [smem:[#allocation56_spill]]  ;;  %v1564_v7 = vstv %s1499_s23 }
  0x5f   :  { %1500 = sst [smem:[#allocation37_spill]] %s886_s10  ;;  %s903_s20 = sld [smem:[#allocation2 + $0x4b]]  ;;  %v232_v2 = vsel %vm220_vm0, %v1564_v7, %v219_v60 }
  0x60   :  { %s1063_s24 = sld [smem:[#allocation2 + $0x4c]]  ;;  %s1551_s8 = sld [smem:[#allocation59_spill]]  ;;  %v1586_v32 = vstv %s888_s28 }
  0x61   :  { %1502 = sst [smem:[#allocation68_spill]] %s894_s9  ;;  %s1552_s26 = sld [smem:[#allocation40_spill]] }
  0x62   :  { %1504 = sst [smem:[#allocation70_spill]] %s901_s17  ;;  %s1553_s30 = sld [smem:[#allocation60_spill]] }
  0x63   :  { %1503 = sst [smem:[#allocation69_spill]] %s896_s13  ;;  %s1558_s6 = sld [smem:[#allocation62_spill]] }
  0x64   :  { %s1554_s2 = sld [smem:[#allocation61_spill]]  ;;  %v1555_v57 = vstv %s1550_s29  ;;  %s1559_s22 = sld [smem:[#allocation51_spill]] }
  0x65   :  { %1505 = sst [smem:[#allocation71_spill]] %s903_s20  ;;  %s1069_s12 = sld [smem:[#allocation2 + $0x4d]]  ;;  %v216_v58 = vsel %vm207_vm15, %v1555_v57, %v203_v52  ;;  %vm415_vm15 = vcmp.eq.s32.totalorder %v922_v9, 28 }
  0x66   :  { %s1079_s10 = sld [smem:[#allocation2 + $0x4e]]  ;;  %s1081_s11 = sld [smem:[#allocation2 + $0x4f]]  ;;  %v229_v1 = vsel %vm220_vm0, %v1563_v54, %v216_v58  ;;  %v1565_v5 = vstv %s1551_s8  ;;  %v300_v40 = vstv %s1063_s24  ;;  %vm428_vm0 = vcmp.eq.s32.totalorder %v922_v9, 29 }
  0x67   :  { %s1091_s16 = sld [smem:[#allocation2 + $0x50]]  ;;  %v236_v8 = vsel %vm233_vm1, %v1565_v5, %v223_v63  ;;  %v1566_v10 = vstv %s1552_s26  ;;  %s1570_s23 = sld [smem:[#allocation65_spill]] }
  0x68   :  { %v239_v38 = vsel %vm233_vm1, %v1566_v10, %v226_v4  ;;  %v1567_v11 = vstv %s1553_s30  ;;  %s1568_s19 = sld [smem:[#allocation64_spill]]  ;;  %s1109_s4 = sld [smem:[#allocation2 + $0x51]]  ;;  %v249_v15 = vsel %vm246_vm2, %v248_v62, %v236_v8 }
  0x69   :  { %v242_v12 = vsel %vm233_vm1, %v1567_v11, %v229_v1  ;;  %s1572_s7 = sld [smem:[#allocation57_spill]]  ;;  %s1111_s20 = sld [smem:[#allocation2 + $0x52]]  ;;  %v1573_v16 = vstv %s1558_s6 }
  0x6a   :  { %v1569_v13 = vstv %s1554_s2  ;;  %v252_v17 = vsel %vm246_vm2, %v1573_v16, %v239_v38  ;;  %v1574_v18 = vstv %s1559_s22  ;;  %s1577_s14 = sld [smem:[#allocation37_spill]]  ;;  %s1129_s15 = sld [smem:[#allocation2 + $0x53]] }
  0x6b   :  { %v245_v14 = vsel %vm233_vm1, %v1569_v13, %v232_v2  ;;  %v255_v19 = vsel %vm246_vm2, %v1574_v18, %v242_v12  ;;  %s1131_s5 = sld [smem:[#allocation2 + $0x54]]  ;;  %s1579_s0 = sld [smem:[#allocation69_spill]]  ;;  %v303_v41 = vstv %s1069_s12  ;;  %vm441_vm1 = vcmp.eq.s32.totalorder %v922_v9, 30 }
  0x6c   :  { %v258_v20 = vsel %vm246_vm2, %v257_v6, %v245_v14  ;;  %s1578_s1 = sld [smem:[#allocation68_spill]]  ;;  %s1580_s18 = sld [smem:[#allocation70_spill]]  ;;  %v268_v23 = vsel %vm259_vm3, %v267_v46, %v255_v19  ;;  %v306_v42 = vstv %s1079_s10  ;;  %v309_v43 = vstv %s1081_s11 }
  0x6d   :  { %s1137_s21 = sld [smem:[#allocation2 + $0x55]]  ;;  %s1582_s25 = sld [smem:[#allocation71_spill]]  ;;  %v1583_v21 = vstv %s1570_s23  ;;  %v313_v48 = vstv %s1091_s16  ;;  %vm454_vm2 = vcmp.eq.s32.totalorder %v922_v9, 31 }
  0x6e   :  { %v1581_v6 = vstv %s1568_s19  ;;  %v265_v22 = vsel %vm259_vm3, %v1583_v21, %v252_v17  ;;  %s1147_s29 = sld [smem:[#allocation2 + $0x56]]  ;;  %s1149_s8 = sld [smem:[#allocation2 + $0x57]]  ;;  %v316_v49 = vstv %s1109_s4 }
  0x6f   :  { %v262_v62 = vsel %vm259_vm3, %v1581_v6, %v249_v15  ;;  %v1584_v24 = vstv %s1572_s7  ;;  %v278_v28 = vsel %vm272_vm4, %v277_v25, %v265_v22  ;;  %s1159_s26 = sld [smem:[#allocation2 + $0x58]]  ;;  %s1161_s30 = sld [smem:[#allocation2 + $0x59]]  ;;  %v319_v50 = vstv %s1111_s20 }
  0x70   :  { %v271_v26 = vsel %vm259_vm3, %v1584_v24, %v258_v20  ;;  %v275_v27 = vsel %vm272_vm4, %v274_v30, %v262_v62  ;;  %v1585_v29 = vstv %s1577_s14  ;;  %s1179_s28 = sld [smem:[#allocation2 + $0x5a]]  ;;  %s1181_s2 = sld [smem:[#allocation2 + $0x5b]]  ;;  %v322_v55 = vstv %s1129_s15 }
  0x71   :  { %v281_v31 = vsel %vm272_vm4, %v1585_v29, %v268_v23  ;;  %v284_v33 = vsel %vm272_vm4, %v1586_v32, %v271_v26  ;;  %v1588_v35 = vstv %s1579_s0  ;;  %s1187_s3 = sld [smem:[#allocation2 + $0x5c]]  ;;  %s1189_s6 = sld [smem:[#allocation2 + $0x5d]]  ;;  %v326_v57 = vstv %s1131_s5 }
  0x72   :  { %v1587_v46 = vstv %s1578_s1  ;;  %v291_v36 = vsel %vm285_vm5, %v1588_v35, %v278_v28  ;;  %v1589_v37 = vstv %s1580_s18  ;;  %s1199_s24 = sld [smem:[#allocation2 + $0x5e]]  ;;  %s1201_s12 = sld [smem:[#allocation2 + $0x5f]] }
  0x73   :  { %v288_v34 = vsel %vm285_vm5, %v1587_v46, %v275_v27  ;;  %v294_v25 = vsel %vm285_vm5, %v1589_v37, %v281_v31  ;;  %v1590_v30 = vstv %s1582_s25  ;;  %v304_v45 = vsel %vm298_vm6, %v303_v41, %v291_v36  ;;  %s1207_s22 = sld [smem:[#allocation2 + $0x60]]  ;;  %s1210_s10 = sld [smem:[#allocation2 + $0x61]] }
  0x74   :  { %v297_v39 = vsel %vm285_vm5, %v1590_v30, %v284_v33  ;;  %v301_v44 = vsel %vm298_vm6, %v300_v40, %v288_v34  ;;  %v307_v3 = vsel %vm298_vm6, %v306_v42, %v294_v25  ;;  %v317_v52 = vsel %vm311_vm7, %v316_v49, %v304_v45  ;;  %s1212_s9 = sld [smem:[#allocation2 + $0x62]]  ;;  %s1217_s11 = sld [smem:[#allocation2 + $0x63]] }
  0x75   :  { %v310_v47 = vsel %vm298_vm6, %v309_v43, %v297_v39  ;;  %v314_v51 = vsel %vm311_vm7, %v313_v48, %v301_v44  ;;  %v320_v53 = vsel %vm311_vm7, %v319_v50, %v307_v3  ;;  %v329_v58 = vstv %s1137_s21  ;;  %s1221_s16 = sld [smem:[#allocation2 + $0x64]]  ;;  %s1223_s19 = sld [smem:[#allocation2 + $0x65]] }
  0x76   :  { %v323_v56 = vsel %vm311_vm7, %v322_v55, %v310_v47  ;;  %v327_v59 = vsel %vm324_vm8, %v326_v57, %v314_v51  ;;  %v330_v60 = vsel %vm324_vm8, %v329_v58, %v317_v52  ;;  %v332_v61 = vstv %s1147_s29  ;;  %s1227_s23 = sld [smem:[#allocation2 + $0x66]]  ;;  %s1229_s27 = sld [smem:[#allocation2 + $0x67]] }
  0x77   :  { %v335_v63 = vstv %s1149_s8  ;;  %v333_v0 = vsel %vm324_vm8, %v332_v61, %v320_v53  ;;  %v339_v54 = vstv %s1159_s26  ;;  %v342_v7 = vstv %s1161_s30  ;;  %s1234_s4 = sld [smem:[#allocation2 + $0x68]]  ;;  %s1236_s7 = sld [smem:[#allocation2 + $0x69]] }
  0x78   :  { %v336_v4 = vsel %vm324_vm8, %v335_v63, %v323_v56  ;;  %v340_v1 = vsel %vm337_vm9, %v339_v54, %v327_v59  ;;  %v345_v2 = vstv %s1179_s28  ;;  %v348_v5 = vstv %s1181_s2  ;;  %s1239_s20 = sld [smem:[#allocation2 + $0x6a]]  ;;  %s1241_s17 = sld [smem:[#allocation2 + $0x6b]] }
  0x79   :  { %v343_v8 = vsel %vm337_vm9, %v342_v7, %v330_v60  ;;  %v346_v10 = vsel %vm337_vm9, %v345_v2, %v333_v0  ;;  %v349_v38 = vsel %vm337_vm9, %v348_v5, %v336_v4  ;;  %v352_v11 = vstv %s1187_s3  ;;  %s1247_s13 = sld [smem:[#allocation2 + $0x6c]]  ;;  %s1249_s14 = sld [smem:[#allocation2 + $0x6d]] }
  0x7a   :  { %v355_v12 = vstv %s1189_s6  ;;  %v358_v13 = vstv %s1199_s24  ;;  %v361_v14 = vstv %s1201_s12  ;;  %v353_v15 = vsel %vm350_vm10, %v352_v11, %v340_v1  ;;  %s1251_s15 = sld [smem:[#allocation2 + $0x6e]]  ;;  %s1253_s5 = sld [smem:[#allocation2 + $0x6f]] }
  0x7b   :  { %v356_v16 = vsel %vm350_vm10, %v355_v12, %v343_v8  ;;  %v359_v17 = vsel %vm350_vm10, %v358_v13, %v346_v10  ;;  %v362_v18 = vsel %vm350_vm10, %v361_v14, %v349_v38  ;;  %v365_v19 = vstv %s1207_s22  ;;  %s1259_s1 = sld [smem:[#allocation2 + $0x70]]  ;;  %s1262_s0 = sld [smem:[#allocation2 + $0x71]] }
  0x7c   :  { %v368_v20 = vstv %s1210_s10  ;;  %v371_v6 = vstv %s1212_s9  ;;  %v366_v62 = vsel %vm363_vm11, %v365_v19, %v353_v15  ;;  %v374_v23 = vstv %s1217_s11  ;;  %s1264_s18 = sld [smem:[#allocation2 + $0x72]]  ;;  %s1269_s21 = sld [smem:[#allocation2 + $0x73]] }
  0x7d   :  { %v369_v21 = vsel %vm363_vm11, %v368_v20, %v356_v16  ;;  %v372_v22 = vsel %vm363_vm11, %v371_v6, %v359_v17  ;;  %v375_v24 = vsel %vm363_vm11, %v374_v23, %v362_v18  ;;  %v378_v26 = vstv %s1221_s16  ;;  %s1273_s25 = sld [smem:[#allocation2 + $0x74]]  ;;  %s1275_s29 = sld [smem:[#allocation2 + $0x75]] }
  0x7e   :  { %v381_v27 = vstv %s1223_s19  ;;  %v379_v28 = vsel %vm376_vm12, %v378_v26, %v366_v62  ;;  %v384_v31 = vstv %s1227_s23  ;;  %v387_v32 = vstv %s1229_s27  ;;  %s1279_s8 = sld [smem:[#allocation2 + $0x76]]  ;;  %s1281_s26 = sld [smem:[#allocation2 + $0x77]] }
  0x7f   :  { %v382_v29 = vsel %vm376_vm12, %v381_v27, %v369_v21  ;;  %v385_v33 = vsel %vm376_vm12, %v384_v31, %v372_v22  ;;  %v388_v46 = vsel %vm376_vm12, %v387_v32, %v375_v24  ;;  %v391_v34 = vstv %s1234_s4  ;;  %s1286_s30 = sld [smem:[#allocation2 + $0x78]]  ;;  %s1288_s28 = sld [smem:[#allocation2 + $0x79]] }
  0x80   :  { %v392_v35 = vsel %vm389_vm13, %v391_v34, %v379_v28  ;;  %v394_v36 = vstv %s1236_s7  ;;  %v397_v37 = vstv %s1239_s20  ;;  %v400_v25 = vstv %s1241_s17  ;;  %s1291_s2 = sld [smem:[#allocation2 + $0x7a]]  ;;  %s1293_s3 = sld [smem:[#allocation2 + $0x7b]] }
  0x81   :  { %v395_v30 = vsel %vm389_vm13, %v394_v36, %v382_v29  ;;  %v398_v39 = vsel %vm389_vm13, %v397_v37, %v385_v33  ;;  %v401_v40 = vsel %vm389_vm13, %v400_v25, %v388_v46  ;;  %v404_v41 = vstv %s1247_s13  ;;  %s1299_s6 = sld [smem:[#allocation2 + $0x7c]]  ;;  %s1301_s24 = sld [smem:[#allocation2 + $0x7d]] }
  0x82   :  { %v407_v42 = vstv %s1249_s14  ;;  %v410_v43 = vstv %s1251_s15  ;;  %v413_v44 = vstv %s1253_s5  ;;  %v405_v45 = vsel %vm402_vm14, %v404_v41, %v392_v35  ;;  %s1303_s12 = sld [smem:[#allocation2 + $0x7e]]  ;;  %s1305_s22 = sld [smem:[#allocation2 + $0x7f]] }
  0x83   :  { %v408_v3 = vsel %vm402_vm14, %v407_v42, %v395_v30  ;;  %v411_v47 = vsel %vm402_vm14, %v410_v43, %v398_v39  ;;  %v414_v48 = vsel %vm402_vm14, %v413_v44, %v401_v40  ;;  %v417_v49 = vstv %s1259_s1  ;;  %s666_s10 = smov [#allocation5]  }
  0x84   :  { %v420_v50 = vstv %s1262_s0  ;;  %v423_v51 = vstv %s1264_s18  ;;  %v418_v52 = vsel %vm415_vm15, %v417_v49, %v405_v45  ;;  %v426_v56 = vstv %s1269_s21  ;;  %s479_s9 = sshll.u32 %s666_s10, 4  ;;  %s480_s9 = int_to_ptr.vmem [resolvable:$true] %s479_s9 }
  0x85   :  { %v421_v53 = vsel %vm415_vm15, %v420_v50, %v408_v3  ;;  %v424_v55 = vsel %vm415_vm15, %v423_v51, %v411_v47  ;;  %v427_v57 = vsel %vm415_vm15, %v426_v56, %v414_v48  ;;  %v430_v58 = vstv %s1273_s25  ;;  %s638_s11 = scalar_lea.vmem %s480_s9, 512  ;;  %p643_p4 = scmp.lt.s32.totalorder %s480_s9, %s480_s9 }
  0x86   :  { %v433_v59 = vstv %s1275_s29  ;;  %v431_v60 = vsel %vm428_vm0, %v430_v58, %v418_v52  ;;  %v436_v63 = vstv %s1279_s8  ;;  %v439_v0 = vstv %s1281_s26  ;;  %p639_p3 = scmp.ne.s32.totalorder %s480_s9, %s638_s11  ;;  %p644_p5 = scmp.lt.s32.totalorder %s638_s11, %s638_s11 }
  0x87   :  { %v434_v61 = vsel %vm428_vm0, %v433_v59, %v421_v53  ;;  %v437_v4 = vsel %vm428_vm0, %v436_v63, %v424_v55  ;;  %v440_v54 = vsel %vm428_vm0, %v439_v0, %v427_v57  ;;  %v443_v1 = vstv %s1286_s30 }
  0x88   :  { %v444_v7 = vsel %vm441_vm1, %v443_v1, %v431_v60  ;;  %v446_v2 = vstv %s1288_s28  ;;  %v449_v5 = vstv %s1291_s2  ;;  %v452_v8 = vstv %s1293_s3  ;;  %p645_p6 = por %p644_p5, %p643_p4 }
  0x89   :  { %v447_v10 = vsel %vm441_vm1, %v446_v2, %v434_v61  ;;  %v450_v38 = vsel %vm441_vm1, %v449_v5, %v437_v4  ;;  %v453_v11 = vsel %vm441_vm1, %v452_v8, %v440_v54  ;;  %v456_v12 = vstv %s1299_s6 }
  0x8a   :  { %v459_v13 = vstv %s1301_s24  ;;  %v462_v14 = vstv %s1303_s12  ;;  %v465_v15 = vstv %s1305_s22  ;;  %v457_v16 = vsel %vm454_vm2, %v456_v12, %v444_v7  ;;  %p646_p7 = pnand %p645_p6, %p639_p3 }
  0x8b   :  { %v460_v17 = vsel %vm454_vm2, %v459_v13, %v447_v10  ;;  %v463_v18 = vsel %vm454_vm2, %v462_v14, %v450_v38  ;;  %v466_v19 = vsel %vm454_vm2, %v465_v15, %v453_v11  ;;  %467 = vst [vmem:[#allocation5] sm:$0xff] %v457_v16 }
  0x8c   :  { %469 = vst [vmem:[#allocation5 + $0x8] sm:$0xff] %v460_v17  ;;  %471 = vst [vmem:[#allocation5 + $0x10] sm:$0xff] %v463_v18 }
  0x8d   :  { %473 = vst [vmem:[#allocation5 + $0x18] sm:$0xff] %v466_v19 }
  0x8e   :  { %649 = shalt.err (!%p646_p7)
}
  0x8f   :  { %s1591_s23 = sld [smem:[#allocation72_spill]] }
  0x95   :  { %s650_s27 = scalar_lea.hbm %s1591_s23, 512 }
  0x96   :  { %p651_p8 = scmp.ne.s32.totalorder %s1591_s23, %s650_s27  ;;  %p654_p9 = scmp.lt.u32.totalorder %s650_s27, %s1591_s23 }
  0x98   :  { %p656_p10 = pnand %p654_p9, %p651_p8 }
  0x9a   :  { %659 = shalt.err (!%p656_p10)
}
  0x9b   :  { %s667_s13 = smov 128   ;;  %s668_s14 = smov 8  }
  0x9c   :  { %485 = dma.vmem_to_hbm [thread:$0]  %s480_s9, 512, %s1591_s23, [#allocation3], %s667_s13, %s667_s13, %s668_s14  }
  0x9d   :  { %662 = dma.done.wait [#allocation3], 512  }
  0x9e   :  { %663 = vsyncadd [#allocation3], 4294966784 }
  0x9f   :  { %489 = vsyncpa [#allocation3], 1 }
  0xa0   :  { %490 = vsyncpa [#allocation4], 1 }

</bundles_post_ra>
